<compile_context>
chip_gen: v7x
topology: tpu7x:2x2x1
jax: 0.10.0
libtpu: 0.0.40
codegen_flags: <defaults>
</compile_context>

<pallas_src>
import functools

import jax
import jax.numpy as jnp
from jax.experimental import pallas as pl
from jax.experimental.pallas import tpu as pltpu


# ---------------------------------------------------------------------------
# Host-side, batch-independent prep (plain JAX / XLA).
# ---------------------------------------------------------------------------
def build_cheb_supports(supports, cheb_k):
    """Reproduces AGCN's support_set construction; returns (K, N, N)."""
    N = supports[0].shape[0]
    polys = []
    for A in supports:
        tk = [jnp.eye(N, dtype=jnp.float32), A.astype(jnp.float32)]
        for _ in range(2, cheb_k):
            tk.append(2.0 * A @ tk[-1] - tk[-2])
        polys.extend(tk)
    return jnp.stack(polys, axis=0)


def init_agcrn_cell_params(key, dim_in, dim_out, cheb_k):
    """Xavier-normal weights, zero bias (matches nn.init in the module)."""
    k1, k2 = jax.random.split(key)

    def xavier(k, fan_in, fan_out):
        std = (2.0 / (fan_in + fan_out)) ** 0.5
        return std * jax.random.normal(k, (fan_in, fan_out), dtype=jnp.float32)

    cin = 2 * cheb_k * (dim_in + dim_out)
    return {
        "wg": xavier(k1, cin, 2 * dim_out),
        "bg": jnp.zeros((1, 2 * dim_out), dtype=jnp.float32),
        "wu": xavier(k2, cin, dim_out),
        "bu": jnp.zeros((1, dim_out), dtype=jnp.float32),
    }


# ---------------------------------------------------------------------------
# Pallas kernel: one decoder LAYER per grid step (grid = (num_layers,)).
# ---------------------------------------------------------------------------
def _decoder_layer_kernel(x_ref, h0_ref, s_ref, wgx_ref, wgs_ref, wux_ref,
                          wus_ref, bg_ref, bu_ref, hout_ref, cur_ref, *,
                          num_k, num_nodes, batch, din_pad, dh, compute_dtype):
    K, N, B = num_k, num_nodes, batch
    BN = B * N
    cdt = compute_dtype
    l = pl.program_id(0)

    # Layer 0 consumes the (channel-padded) decoder input; later layers
    # consume the previous layer's hidden state carried in VMEM scratch.
    @pl.when(l == 0)
    def _():
        cur_ref[...] = x_ref[...].reshape(BN, din_pad)

    s = s_ref[...]                        # (K*N, N) stacked Chebyshev supports
    x2 = cur_ref[...]                     # (B*N, din_pad) f32
    h2 = h0_ref[0].reshape(BN, dh)        # (B*N, dh)      f32

    def gconv(v):
        """Graph conv of v:(B*N, C): one (K*N,N)x(N,C) MXU GEMM per batch
        element (Chebyshev K folded into M), laid out as (B*N, K*C) with the
        (k, channel) column ordering the PyTorch weights expect."""
        rows = []
        for b in range(B):
            g = jnp.dot(s, v[b * N:(b + 1) * N, :],
                        preferred_element_type=jnp.float32).astype(cdt)
            rows.append(jnp.concatenate(
                [g[k * N:(k + 1) * N, :] for k in range(K)], axis=-1))
        return jnp.concatenate(rows, axis=0)      # (B*N, K*C)

    gx = gconv(x2.astype(cdt))            # shared by gate & candidate branch
    gh = gconv(h2.astype(cdt))

    # ---- gate: z_r = sigmoid(AGCN([x, state]))  (weights row-split) -------
    zr = (jnp.dot(gx, wgx_ref[0], preferred_element_type=jnp.float32)
          + jnp.dot(gh, wgs_ref[0], preferred_element_type=jnp.float32)
          + bg_ref[0])
    zr = jax.nn.sigmoid(zr)               # (B*N, 2*dh) f32
    z = zr[:, :dh]
    r = zr[:, dh:]

    # ---- candidate: hc = tanh(AGCN([x, z*state]))  (S@x part reused) ------
    gc = gconv((z * h2).astype(cdt))
    hc = jnp.tanh(jnp.dot(gx, wux_ref[0], preferred_element_type=jnp.float32)
                  + jnp.dot(gc, wus_ref[0], preferred_element_type=jnp.float32)
                  + bu_ref[0])

    # ---- GRU mix -----------------------------------------------------------
    h = r * h2 + (1.0 - r) * hc                       # (B*N, dh) f32
    hout_ref[...] = h.reshape(1, B, N, dh)

    # Carry h as the next layer's input (zero-pad channels up to din_pad).
    @pl.when(l + 1 < pl.num_programs(0))
    def _():
        if din_pad == dh:
            cur_ref[...] = h
        else:
            cur_ref[...] = jnp.concatenate(
                [h, jnp.zeros((BN, din_pad - dh), jnp.float32)], axis=-1)


# ---------------------------------------------------------------------------
# Wrapper: host-side weight split / stacking + single pallas_call.
# ---------------------------------------------------------------------------
def adcrnn_decoder_forward(xt, init_state, supports, params, cheb_k,
                           compute_dtype=jnp.float32):
    """xt:(B,N,dim_in), init_state:(L,B,N,dim_out), supports: list of (N,N).

    Returns (last_hidden, [per-layer hidden]) like ADCRNN_Decoder.forward.
    """
    L = len(params)
    B, N, dim_in = xt.shape
    dh = init_state.shape[-1]
    din_pad = max(dim_in, dh)             # uniform input width across layers

    supp = build_cheb_supports(supports, cheb_k)              # (K, N, N)
    K = supp.shape[0]
    s_stack = supp.reshape(K * N, N).astype(compute_dtype)    # (K*N, N)

    # Split each layer's AGCN weights into x-part / state-part (row split on
    # the (k, channel) ordering), zero-pad the x-part to din_pad, stack layers.
    wgx_l, wgs_l, wux_l, wus_l, bg_l, bu_l = [], [], [], [], [], []
    for i, p in enumerate(params):
        din = dim_in if i == 0 else dh
        cin = din + dh
        wg = p["wg"].reshape(K, cin, 2 * dh)
        wu = p["wu"].reshape(K, cin, dh)
        pad = ((0, 0), (0, din_pad - din), (0, 0))
        wgx_l.append(jnp.pad(wg[:, :din, :], pad).reshape(K * din_pad, 2 * dh))
        wux_l.append(jnp.pad(wu[:, :din, :], pad).reshape(K * din_pad, dh))
        wgs_l.append(wg[:, din:, :].reshape(K * dh, 2 * dh))
        wus_l.append(wu[:, din:, :].reshape(K * dh, dh))
        bg_l.append(p["bg"])
        bu_l.append(p["bu"])
    wgx = jnp.stack(wgx_l).astype(compute_dtype)    # (L, K*din_pad, 2*dh)
    wgs = jnp.stack(wgs_l).astype(compute_dtype)    # (L, K*dh,      2*dh)
    wux = jnp.stack(wux_l).astype(compute_dtype)    # (L, K*din_pad, dh)
    wus = jnp.stack(wus_l).astype(compute_dtype)    # (L, K*dh,      dh)
    bg = jnp.stack(bg_l)                            # (L, 1, 2*dh) f32
    bu = jnp.stack(bu_l)                            # (L, 1, dh)   f32

    x_pad = jnp.pad(xt, ((0, 0), (0, 0), (0, din_pad - dim_in)))

    kernel = functools.partial(
        _decoder_layer_kernel, num_k=K, num_nodes=N, batch=B,
        din_pad=din_pad, dh=dh, compute_dtype=compute_dtype)

    hidden = pl.pallas_call(
        kernel,
        out_shape=jax.ShapeDtypeStruct((L, B, N, dh), jnp.float32),
        grid_spec=pltpu.PrefetchScalarGridSpec(
            num_scalar_prefetch=0,
            grid=(L,),
            in_specs=[
                pl.BlockSpec((B, N, din_pad), lambda l: (0, 0, 0)),        # x (layer 0)
                pl.BlockSpec((1, B, N, dh), lambda l: (l, 0, 0, 0)),       # init_state[l]
                pl.BlockSpec((K * N, N), lambda l: (0, 0)),                # stacked supports
                pl.BlockSpec((1, K * din_pad, 2 * dh), lambda l: (l, 0, 0)),  # Wg_x
                pl.BlockSpec((1, K * dh, 2 * dh), lambda l: (l, 0, 0)),       # Wg_s
                pl.BlockSpec((1, K * din_pad, dh), lambda l: (l, 0, 0)),      # Wu_x
                pl.BlockSpec((1, K * dh, dh), lambda l: (l, 0, 0)),           # Wu_s
                pl.BlockSpec((1, 1, 2 * dh), lambda l: (l, 0, 0)),            # b_gate
                pl.BlockSpec((1, 1, dh), lambda l: (l, 0, 0)),                # b_update
            ],
            out_specs=pl.BlockSpec((1, B, N, dh), lambda l: (l, 0, 0, 0)),
            scratch_shapes=[pltpu.VMEM((B * N, din_pad), jnp.float32)],
        ),
        compiler_params=pltpu.CompilerParams(
            dimension_semantics=("arbitrary",),   # layers are sequential
            vmem_limit_bytes=32 * 1024 * 1024,    # explicit guard (v7x: 64 MiB VMEM)
        ),
    )(x_pad, init_state, s_stack, wgx, wgs, wux, wus, bg, bu)

    return hidden[-1], [hidden[i] for i in range(L)]


# ---------------------------------------------------------------------------
# Pure-JAX reference (mirrors the PyTorch code) for a correctness check.
# ---------------------------------------------------------------------------
def _agcn_ref(x, supp, w, b):
    xg = jnp.concatenate([jnp.einsum("nm,bmc->bnc", supp[k], x)
                          for k in range(supp.shape[0])], axis=-1)
    return jnp.einsum("bni,io->bno", xg, w) + b[0]


def _cell_ref(x, state, supp, p):
    dh = state.shape[-1]
    zr = jax.nn.sigmoid(_agcn_ref(jnp.concatenate([x, state], -1), supp,
                                  p["wg"], p["bg"]))
    z, r = zr[..., :dh], zr[..., dh:]
    hc = jnp.tanh(_agcn_ref(jnp.concatenate([x, z * state], -1), supp,
                            p["wu"], p["bu"]))
    return r * state + (1.0 - r) * hc


def _decoder_ref(xt, init_state, supports, params, cheb_k):
    supp = build_cheb_supports(supports, cheb_k)
    current = xt
    hidden = []
    for i, p in enumerate(params):
        current = _cell_ref(current, init_state[i], supp, p)
        hidden.append(current)
    return current, hidden


# ---------------------------------------------------------------------------
if __name__ == "__main__":
    # Small, module-consistent shapes.
    B, N, DIM_IN, DIM_OUT, CHEB_K, NUM_LAYERS = 2, 16, 4, 32, 3, 2

    key = jax.random.PRNGKey(0)
    k_x, k_s, k_a1, k_a2, k_p = jax.random.split(key, 5)

    xt = jax.random.normal(k_x, (B, N, DIM_IN), dtype=jnp.float32)
    init_state = jax.random.normal(k_s, (NUM_LAYERS, B, N, DIM_OUT),
                                   dtype=jnp.float32)
    # Two row-normalized adaptive adjacency matrices, as MegaCRN uses.
    supports = [
        jax.nn.softmax(jax.random.normal(k_a1, (N, N), dtype=jnp.float32), -1),
        jax.nn.softmax(jax.random.normal(k_a2, (N, N), dtype=jnp.float32), -1),
    ]

    # Layer 0 consumes DIM_IN, later layers consume DIM_OUT.
    pkeys = jax.random.split(k_p, NUM_LAYERS)
    params = [init_agcrn_cell_params(pkeys[0], DIM_IN, DIM_OUT, CHEB_K)]
    for li in range(1, NUM_LAYERS):
        params.append(init_agcrn_cell_params(pkeys[li], DIM_OUT, DIM_OUT, CHEB_K))

    ref_out, ref_hidden = _decoder_ref(xt, init_state, supports, params, CHEB_K)

    # f32 path: exact-semantics check against the PyTorch-equivalent reference.
    out, hidden = adcrnn_decoder_forward(xt, init_state, supports, params,
                                         CHEB_K, compute_dtype=jnp.float32)
    out = jax.block_until_ready(out)
    hidden = [jax.block_until_ready(h) for h in hidden]
    assert out.shape == (B, N, DIM_OUT)
    assert len(hidden) == NUM_LAYERS and hidden[-1].shape == (B, N, DIM_OUT)
    assert jnp.allclose(out, ref_out, rtol=1e-3, atol=1e-3)
    assert jnp.allclose(hidden[0], ref_hidden[0], rtol=1e-3, atol=1e-3)

    # bf16 supports/weights (v6e/v7x MXU fast path), f32 accumulation.
    out_bf, _ = adcrnn_decoder_forward(xt, init_state, supports, params,
                                       CHEB_K, compute_dtype=jnp.bfloat16)
    out_bf = jax.block_until_ready(out_bf)
    assert jnp.allclose(out_bf, ref_out, rtol=5e-2, atol=5e-2)

    print("KERNEL_OK")
</pallas_src>

<mosaic_0001>
module attributes {stable_mosaic.version = 11 : i64} {
  func.func @_decoder_layer_kernel(%arg0: i32, %arg1: memref<2x16x32xf32, #tpu.memory_space<vmem>>, %arg2: memref<1x2x16x32xf32, #tpu.memory_space<vmem>>, %arg3: memref<96x16xf32, #tpu.memory_space<vmem>>, %arg4: memref<1x192x64xf32, #tpu.memory_space<vmem>>, %arg5: memref<1x192x64xf32, #tpu.memory_space<vmem>>, %arg6: memref<1x192x32xf32, #tpu.memory_space<vmem>>, %arg7: memref<1x192x32xf32, #tpu.memory_space<vmem>>, %arg8: memref<1x1x64xf32, #tpu.memory_space<vmem>>, %arg9: memref<1x1x32xf32, #tpu.memory_space<vmem>>, %arg10: memref<1x2x16x32xf32, #tpu.memory_space<vmem>>, %arg11: memref<32x32xf32, #tpu.memory_space<vmem>>) attributes {dimension_semantics = [#tpu.dimension_semantics<arbitrary>], iteration_bounds = array<i64: 2>, scalar_prefetch = 0 : i64, scratch_operands = 1 : i64, tpu.core_type = #tpu.core_type<tc>, window_params = [{pipeline_mode = #tpu.pipeline_mode<synchronous>, transform_indices = @transform_0, window_bounds = array<i64: 2, 16, 32>}, {transform_indices = @transform_1, window_bounds = array<i64: 1, 2, 16, 32>}, {pipeline_mode = #tpu.pipeline_mode<synchronous>, transform_indices = @transform_2, window_bounds = array<i64: 96, 16>}, {transform_indices = @transform_3, window_bounds = array<i64: 1, 192, 64>}, {transform_indices = @transform_4, window_bounds = array<i64: 1, 192, 64>}, {transform_indices = @transform_5, window_bounds = array<i64: 1, 192, 32>}, {transform_indices = @transform_6, window_bounds = array<i64: 1, 192, 32>}, {transform_indices = @transform_7, window_bounds = array<i64: 1, 1, 64>}, {transform_indices = @transform_8, window_bounds = array<i64: 1, 1, 32>}, {transform_indices = @transform_9, window_bounds = array<i64: 1, 2, 16, 32>}]} {
    %c0_i32 = arith.constant 0 : i32
    %0 = arith.cmpi eq, %arg0, %c0_i32 : i32
    %1 = arith.extui %0 : i1 to i32
    %c0_i32_0 = arith.constant 0 : i32
    %2 = arith.cmpi ne, %1, %c0_i32_0 : i32
    scf.if %2 {
      %c0_42 = arith.constant 0 : index
      %c0_43 = arith.constant 0 : index
      %c0_44 = arith.constant 0 : index
      %107 = vector.load %arg1[%c0_42, %c0_43, %c0_44] : memref<2x16x32xf32, #tpu.memory_space<vmem>>, vector<2x16x32xf32>
      %108 = vector.shape_cast %107 : vector<2x16x32xf32> to vector<32x32xf32>
      %c0_45 = arith.constant 0 : index
      %c0_46 = arith.constant 0 : index
      %109 = vector.load %arg11[%c0_45, %c0_46] : memref<32x32xf32, #tpu.memory_space<vmem>>, vector<32x32xf32>
      tpu.vector_store %arg11[%c0_45, %c0_46], %108 {strides = array<i32>} : memref<32x32xf32, #tpu.memory_space<vmem>>, vector<32x32xf32>,
    } else {
    }
    %c0 = arith.constant 0 : index
    %c0_1 = arith.constant 0 : index
    %3 = vector.load %arg3[%c0, %c0_1] : memref<96x16xf32, #tpu.memory_space<vmem>>, vector<96x16xf32>
    %c0_2 = arith.constant 0 : index
    %c0_3 = arith.constant 0 : index
    %4 = vector.load %arg11[%c0_2, %c0_3] : memref<32x32xf32, #tpu.memory_space<vmem>>, vector<32x32xf32>
    %c0_4 = arith.constant 0 : index
    %c0_5 = arith.constant 0 : index
    %c0_6 = arith.constant 0 : index
    %c0_7 = arith.constant 0 : index
    %5 = vector.load %arg2[%c0_4, %c0_5, %c0_6, %c0_7] : memref<1x2x16x32xf32, #tpu.memory_space<vmem>>, vector<1x2x16x32xf32>
    %6 = vector.shape_cast %5 : vector<1x2x16x32xf32> to vector<2x16x32xf32>
    %7 = vector.shape_cast %6 : vector<2x16x32xf32> to vector<32x32xf32>
    %8 = vector.extract_strided_slice %4 {offsets = [0, 0], sizes = [16, 32], strides = [1, 1]} : vector<32x32xf32> to vector<16x32xf32>
    %cst = arith.constant dense<0.000000e+00> : vector<96x32xf32>
    %9 = tpu.matmul %3, %8, %cst {dimension_numbers = #tpu.dot_dimension_numbers<[1], [0], [0], [1], [0, 0, 1, 1], [], []>} : vector<96x16xf32>, vector<16x32xf32>, vector<96x32xf32> -> vector<96x32xf32>
    %10 = vector.extract_strided_slice %9 {offsets = [0, 0], sizes = [16, 32], strides = [1, 1]} : vector<96x32xf32> to vector<16x32xf32>
    %11 = vector.extract_strided_slice %9 {offsets = [16, 0], sizes = [16, 32], strides = [1, 1]} : vector<96x32xf32> to vector<16x32xf32>
    %12 = vector.extract_strided_slice %9 {offsets = [32, 0], sizes = [16, 32], strides = [1, 1]} : vector<96x32xf32> to vector<16x32xf32>
    %13 = vector.extract_strided_slice %9 {offsets = [48, 0], sizes = [16, 32], strides = [1, 1]} : vector<96x32xf32> to vector<16x32xf32>
    %14 = vector.extract_strided_slice %9 {offsets = [64, 0], sizes = [16, 32], strides = [1, 1]} : vector<96x32xf32> to vector<16x32xf32>
    %15 = vector.extract_strided_slice %9 {offsets = [80, 0], sizes = [16, 32], strides = [1, 1]} : vector<96x32xf32> to vector<16x32xf32>
    %16 = tpu.concatenate %10, %11, %12, %13, %14, %15 in 1 : vector<16x32xf32>, vector<16x32xf32>, vector<16x32xf32>, vector<16x32xf32>, vector<16x32xf32>, vector<16x32xf32> -> vector<16x192xf32>
    %17 = vector.extract_strided_slice %4 {offsets = [16, 0], sizes = [16, 32], strides = [1, 1]} : vector<32x32xf32> to vector<16x32xf32>
    %cst_8 = arith.constant dense<0.000000e+00> : vector<96x32xf32>
    %18 = tpu.matmul %3, %17, %cst_8 {dimension_numbers = #tpu.dot_dimension_numbers<[1], [0], [0], [1], [0, 0, 1, 1], [], []>} : vector<96x16xf32>, vector<16x32xf32>, vector<96x32xf32> -> vector<96x32xf32>
    %19 = vector.extract_strided_slice %18 {offsets = [0, 0], sizes = [16, 32], strides = [1, 1]} : vector<96x32xf32> to vector<16x32xf32>
    %20 = vector.extract_strided_slice %18 {offsets = [16, 0], sizes = [16, 32], strides = [1, 1]} : vector<96x32xf32> to vector<16x32xf32>
    %21 = vector.extract_strided_slice %18 {offsets = [32, 0], sizes = [16, 32], strides = [1, 1]} : vector<96x32xf32> to vector<16x32xf32>
    %22 = vector.extract_strided_slice %18 {offsets = [48, 0], sizes = [16, 32], strides = [1, 1]} : vector<96x32xf32> to vector<16x32xf32>
    %23 = vector.extract_strided_slice %18 {offsets = [64, 0], sizes = [16, 32], strides = [1, 1]} : vector<96x32xf32> to vector<16x32xf32>
    %24 = vector.extract_strided_slice %18 {offsets = [80, 0], sizes = [16, 32], strides = [1, 1]} : vector<96x32xf32> to vector<16x32xf32>
    %25 = tpu.concatenate %19, %20, %21, %22, %23, %24 in 1 : vector<16x32xf32>, vector<16x32xf32>, vector<16x32xf32>, vector<16x32xf32>, vector<16x32xf32>, vector<16x32xf32> -> vector<16x192xf32>
    %26 = tpu.concatenate %16, %25 in 0 : vector<16x192xf32>, vector<16x192xf32> -> vector<32x192xf32>
    %27 = vector.extract_strided_slice %7 {offsets = [0, 0], sizes = [16, 32], strides = [1, 1]} : vector<32x32xf32> to vector<16x32xf32>
    %cst_9 = arith.constant dense<0.000000e+00> : vector<96x32xf32>
    %28 = tpu.matmul %3, %27, %cst_9 {dimension_numbers = #tpu.dot_dimension_numbers<[1], [0], [0], [1], [0, 0, 1, 1], [], []>} : vector<96x16xf32>, vector<16x32xf32>, vector<96x32xf32> -> vector<96x32xf32>
    %29 = vector.extract_strided_slice %28 {offsets = [0, 0], sizes = [16, 32], strides = [1, 1]} : vector<96x32xf32> to vector<16x32xf32>
    %30 = vector.extract_strided_slice %28 {offsets = [16, 0], sizes = [16, 32], strides = [1, 1]} : vector<96x32xf32> to vector<16x32xf32>
    %31 = vector.extract_strided_slice %28 {offsets = [32, 0], sizes = [16, 32], strides = [1, 1]} : vector<96x32xf32> to vector<16x32xf32>
    %32 = vector.extract_strided_slice %28 {offsets = [48, 0], sizes = [16, 32], strides = [1, 1]} : vector<96x32xf32> to vector<16x32xf32>
    %33 = vector.extract_strided_slice %28 {offsets = [64, 0], sizes = [16, 32], strides = [1, 1]} : vector<96x32xf32> to vector<16x32xf32>
    %34 = vector.extract_strided_slice %28 {offsets = [80, 0], sizes = [16, 32], strides = [1, 1]} : vector<96x32xf32> to vector<16x32xf32>
    %35 = tpu.concatenate %29, %30, %31, %32, %33, %34 in 1 : vector<16x32xf32>, vector<16x32xf32>, vector<16x32xf32>, vector<16x32xf32>, vector<16x32xf32>, vector<16x32xf32> -> vector<16x192xf32>
    %36 = vector.extract_strided_slice %7 {offsets = [16, 0], sizes = [16, 32], strides = [1, 1]} : vector<32x32xf32> to vector<16x32xf32>
    %cst_10 = arith.constant dense<0.000000e+00> : vector<96x32xf32>
    %37 = tpu.matmul %3, %36, %cst_10 {dimension_numbers = #tpu.dot_dimension_numbers<[1], [0], [0], [1], [0, 0, 1, 1], [], []>} : vector<96x16xf32>, vector<16x32xf32>, vector<96x32xf32> -> vector<96x32xf32>
    %38 = vector.extract_strided_slice %37 {offsets = [0, 0], sizes = [16, 32], strides = [1, 1]} : vector<96x32xf32> to vector<16x32xf32>
    %39 = vector.extract_strided_slice %37 {offsets = [16, 0], sizes = [16, 32], strides = [1, 1]} : vector<96x32xf32> to vector<16x32xf32>
    %40 = vector.extract_strided_slice %37 {offsets = [32, 0], sizes = [16, 32], strides = [1, 1]} : vector<96x32xf32> to vector<16x32xf32>
    %41 = vector.extract_strided_slice %37 {offsets = [48, 0], sizes = [16, 32], strides = [1, 1]} : vector<96x32xf32> to vector<16x32xf32>
    %42 = vector.extract_strided_slice %37 {offsets = [64, 0], sizes = [16, 32], strides = [1, 1]} : vector<96x32xf32> to vector<16x32xf32>
    %43 = vector.extract_strided_slice %37 {offsets = [80, 0], sizes = [16, 32], strides = [1, 1]} : vector<96x32xf32> to vector<16x32xf32>
    %44 = tpu.concatenate %38, %39, %40, %41, %42, %43 in 1 : vector<16x32xf32>, vector<16x32xf32>, vector<16x32xf32>, vector<16x32xf32>, vector<16x32xf32>, vector<16x32xf32> -> vector<16x192xf32>
    %45 = tpu.concatenate %35, %44 in 0 : vector<16x192xf32>, vector<16x192xf32> -> vector<32x192xf32>
    %c0_11 = arith.constant 0 : index
    %c0_12 = arith.constant 0 : index
    %c0_13 = arith.constant 0 : index
    %46 = vector.load %arg4[%c0_11, %c0_12, %c0_13] : memref<1x192x64xf32, #tpu.memory_space<vmem>>, vector<1x192x64xf32>
    %47 = vector.shape_cast %46 : vector<1x192x64xf32> to vector<192x64xf32>
    %cst_14 = arith.constant dense<0.000000e+00> : vector<32x64xf32>
    %48 = tpu.matmul %26, %47, %cst_14 {dimension_numbers = #tpu.dot_dimension_numbers<[1], [0], [0], [1], [0, 0, 1, 1], [], []>} : vector<32x192xf32>, vector<192x64xf32>, vector<32x64xf32> -> vector<32x64xf32>
    %c0_15 = arith.constant 0 : index
    %c0_16 = arith.constant 0 : index
    %c0_17 = arith.constant 0 : index
    %49 = vector.load %arg5[%c0_15, %c0_16, %c0_17] : memref<1x192x64xf32, #tpu.memory_space<vmem>>, vector<1x192x64xf32>
    %50 = vector.shape_cast %49 : vector<1x192x64xf32> to vector<192x64xf32>
    %cst_18 = arith.constant dense<0.000000e+00> : vector<32x64xf32>
    %51 = tpu.matmul %45, %50, %cst_18 {dimension_numbers = #tpu.dot_dimension_numbers<[1], [0], [0], [1], [0, 0, 1, 1], [], []>} : vector<32x192xf32>, vector<192x64xf32>, vector<32x64xf32> -> vector<32x64xf32>
    %52 = arith.addf %48, %51 : vector<32x64xf32>
    %c0_19 = arith.constant 0 : index
    %c0_20 = arith.constant 0 : index
    %c0_21 = arith.constant 0 : index
    %53 = vector.load %arg8[%c0_19, %c0_20, %c0_21] : memref<1x1x64xf32, #tpu.memory_space<vmem>>, vector<1x1x64xf32>
    %54 = vector.shape_cast %53 : vector<1x1x64xf32> to vector<1x64xf32>
    %55 = vector.broadcast %54 : vector<1x64xf32> to vector<32x64xf32>
    %56 = arith.addf %52, %55 : vector<32x64xf32>
    %57 = arith.negf %56 : vector<32x64xf32>
    %58 = math.exp %57 : vector<32x64xf32>
    %cst_22 = arith.constant 1.000000e+00 : f32
    %59 = vector.broadcast %cst_22 : f32 to vector<32x64xf32>
    %60 = arith.addf %59, %58 : vector<32x64xf32>
    %61 = arith.divf %59, %60 : vector<32x64xf32>
    %62 = vector.extract_strided_slice %61 {offsets = [0, 0], sizes = [32, 32], strides = [1, 1]} : vector<32x64xf32> to vector<32x32xf32>
    %63 = vector.extract_strided_slice %61 {offsets = [0, 32], sizes = [32, 32], strides = [1, 1]} : vector<32x64xf32> to vector<32x32xf32>
    %64 = arith.mulf %62, %7 : vector<32x32xf32>
    %65 = vector.extract_strided_slice %64 {offsets = [0, 0], sizes = [16, 32], strides = [1, 1]} : vector<32x32xf32> to vector<16x32xf32>
    %cst_23 = arith.constant dense<0.000000e+00> : vector<96x32xf32>
    %66 = tpu.matmul %3, %65, %cst_23 {dimension_numbers = #tpu.dot_dimension_numbers<[1], [0], [0], [1], [0, 0, 1, 1], [], []>} : vector<96x16xf32>, vector<16x32xf32>, vector<96x32xf32> -> vector<96x32xf32>
    %67 = vector.extract_strided_slice %66 {offsets = [0, 0], sizes = [16, 32], strides = [1, 1]} : vector<96x32xf32> to vector<16x32xf32>
    %68 = vector.extract_strided_slice %66 {offsets = [16, 0], sizes = [16, 32], strides = [1, 1]} : vector<96x32xf32> to vector<16x32xf32>
    %69 = vector.extract_strided_slice %66 {offsets = [32, 0], sizes = [16, 32], strides = [1, 1]} : vector<96x32xf32> to vector<16x32xf32>
    %70 = vector.extract_strided_slice %66 {offsets = [48, 0], sizes = [16, 32], strides = [1, 1]} : vector<96x32xf32> to vector<16x32xf32>
    %71 = vector.extract_strided_slice %66 {offsets = [64, 0], sizes = [16, 32], strides = [1, 1]} : vector<96x32xf32> to vector<16x32xf32>
    %72 = vector.extract_strided_slice %66 {offsets = [80, 0], sizes = [16, 32], strides = [1, 1]} : vector<96x32xf32> to vector<16x32xf32>
    %73 = tpu.concatenate %67, %68, %69, %70, %71, %72 in 1 : vector<16x32xf32>, vector<16x32xf32>, vector<16x32xf32>, vector<16x32xf32>, vector<16x32xf32>, vector<16x32xf32> -> vector<16x192xf32>
    %74 = vector.extract_strided_slice %64 {offsets = [16, 0], sizes = [16, 32], strides = [1, 1]} : vector<32x32xf32> to vector<16x32xf32>
    %cst_24 = arith.constant dense<0.000000e+00> : vector<96x32xf32>
    %75 = tpu.matmul %3, %74, %cst_24 {dimension_numbers = #tpu.dot_dimension_numbers<[1], [0], [0], [1], [0, 0, 1, 1], [], []>} : vector<96x16xf32>, vector<16x32xf32>, vector<96x32xf32> -> vector<96x32xf32>
    %76 = vector.extract_strided_slice %75 {offsets = [0, 0], sizes = [16, 32], strides = [1, 1]} : vector<96x32xf32> to vector<16x32xf32>
    %77 = vector.extract_strided_slice %75 {offsets = [16, 0], sizes = [16, 32], strides = [1, 1]} : vector<96x32xf32> to vector<16x32xf32>
    %78 = vector.extract_strided_slice %75 {offsets = [32, 0], sizes = [16, 32], strides = [1, 1]} : vector<96x32xf32> to vector<16x32xf32>
    %79 = vector.extract_strided_slice %75 {offsets = [48, 0], sizes = [16, 32], strides = [1, 1]} : vector<96x32xf32> to vector<16x32xf32>
    %80 = vector.extract_strided_slice %75 {offsets = [64, 0], sizes = [16, 32], strides = [1, 1]} : vector<96x32xf32> to vector<16x32xf32>
    %81 = vector.extract_strided_slice %75 {offsets = [80, 0], sizes = [16, 32], strides = [1, 1]} : vector<96x32xf32> to vector<16x32xf32>
    %82 = tpu.concatenate %76, %77, %78, %79, %80, %81 in 1 : vector<16x32xf32>, vector<16x32xf32>, vector<16x32xf32>, vector<16x32xf32>, vector<16x32xf32>, vector<16x32xf32> -> vector<16x192xf32>
    %83 = tpu.concatenate %73, %82 in 0 : vector<16x192xf32>, vector<16x192xf32> -> vector<32x192xf32>
    %c0_25 = arith.constant 0 : index
    %c0_26 = arith.constant 0 : index
    %c0_27 = arith.constant 0 : index
    %84 = vector.load %arg6[%c0_25, %c0_26, %c0_27] : memref<1x192x32xf32, #tpu.memory_space<vmem>>, vector<1x192x32xf32>
    %85 = vector.shape_cast %84 : vector<1x192x32xf32> to vector<192x32xf32>
    %cst_28 = arith.constant dense<0.000000e+00> : vector<32x32xf32>
    %86 = tpu.matmul %26, %85, %cst_28 {dimension_numbers = #tpu.dot_dimension_numbers<[1], [0], [0], [1], [0, 0, 1, 1], [], []>} : vector<32x192xf32>, vector<192x32xf32>, vector<32x32xf32> -> vector<32x32xf32>
    %c0_29 = arith.constant 0 : index
    %c0_30 = arith.constant 0 : index
    %c0_31 = arith.constant 0 : index
    %87 = vector.load %arg7[%c0_29, %c0_30, %c0_31] : memref<1x192x32xf32, #tpu.memory_space<vmem>>, vector<1x192x32xf32>
    %88 = vector.shape_cast %87 : vector<1x192x32xf32> to vector<192x32xf32>
    %cst_32 = arith.constant dense<0.000000e+00> : vector<32x32xf32>
    %89 = tpu.matmul %83, %88, %cst_32 {dimension_numbers = #tpu.dot_dimension_numbers<[1], [0], [0], [1], [0, 0, 1, 1], [], []>} : vector<32x192xf32>, vector<192x32xf32>, vector<32x32xf32> -> vector<32x32xf32>
    %90 = arith.addf %86, %89 : vector<32x32xf32>
    %c0_33 = arith.constant 0 : index
    %c0_34 = arith.constant 0 : index
    %c0_35 = arith.constant 0 : index
    %91 = vector.load %arg9[%c0_33, %c0_34, %c0_35] : memref<1x1x32xf32, #tpu.memory_space<vmem>>, vector<1x1x32xf32>
    %92 = vector.shape_cast %91 : vector<1x1x32xf32> to vector<1x32xf32>
    %93 = vector.broadcast %92 : vector<1x32xf32> to vector<32x32xf32>
    %94 = arith.addf %90, %93 : vector<32x32xf32>
    %95 = math.tanh %94 : vector<32x32xf32>
    %96 = arith.mulf %63, %7 : vector<32x32xf32>
    %cst_36 = arith.constant 1.000000e+00 : f32
    %97 = vector.broadcast %cst_36 : f32 to vector<32x32xf32>
    %98 = arith.subf %97, %63 : vector<32x32xf32>
    %99 = arith.mulf %98, %95 : vector<32x32xf32>
    %100 = arith.addf %96, %99 : vector<32x32xf32>
    %101 = vector.shape_cast %100 : vector<32x32xf32> to vector<1x2x16x32xf32>
    %c0_37 = arith.constant 0 : index
    %c0_38 = arith.constant 0 : index
    %c0_39 = arith.constant 0 : index
    %c0_40 = arith.constant 0 : index
    %102 = vector.load %arg10[%c0_37, %c0_38, %c0_39, %c0_40] : memref<1x2x16x32xf32, #tpu.memory_space<vmem>>, vector<1x2x16x32xf32>
    tpu.vector_store %arg10[%c0_37, %c0_38, %c0_39, %c0_40], %101 {strides = array<i32>} : memref<1x2x16x32xf32, #tpu.memory_space<vmem>>, vector<1x2x16x32xf32>,
    %c1_i32 = arith.constant 1 : i32
    %103 = arith.addi %arg0, %c1_i32 : i32
    %c2_i32 = arith.constant 2 : i32
    %104 = arith.cmpi slt, %103, %c2_i32 : i32
    %105 = arith.extui %104 : i1 to i32
    %c0_i32_41 = arith.constant 0 : i32
    %106 = arith.cmpi ne, %105, %c0_i32_41 : i32
    scf.if %106 {
      %c0_42 = arith.constant 0 : index
      %c0_43 = arith.constant 0 : index
      %107 = vector.load %arg11[%c0_42, %c0_43] : memref<32x32xf32, #tpu.memory_space<vmem>>, vector<32x32xf32>
      tpu.vector_store %arg11[%c0_42, %c0_43], %100 {strides = array<i32>} : memref<32x32xf32, #tpu.memory_space<vmem>>, vector<32x32xf32>,
    } else {
    }
    return
  }
  func.func @transform_0(%arg0: i32) -> (i32, i32, i32) {
    %c0_i32 = arith.constant 0 : i32
    %c0_i32_0 = arith.constant 0 : i32
    %c0_i32_1 = arith.constant 0 : i32
    %c0_i32_2 = arith.constant 0 : i32
    return %c0_i32, %c0_i32_0, %c0_i32_1 : i32, i32, i32
  }
  func.func @transform_1(%arg0: i32) -> (i32, i32, i32, i32) {
    %c0_i32 = arith.constant 0 : i32
    %c0_i32_0 = arith.constant 0 : i32
    %c0_i32_1 = arith.constant 0 : i32
    %c0_i32_2 = arith.constant 0 : i32
    return %arg0, %c0_i32, %c0_i32_0, %c0_i32_1 : i32, i32, i32, i32
  }
  func.func @transform_2(%arg0: i32) -> (i32, i32) {
    %c0_i32 = arith.constant 0 : i32
    %c0_i32_0 = arith.constant 0 : i32
    %c0_i32_1 = arith.constant 0 : i32
    return %c0_i32, %c0_i32_0 : i32, i32
  }
  func.func @transform_3(%arg0: i32) -> (i32, i32, i32) {
    %c0_i32 = arith.constant 0 : i32
    %c0_i32_0 = arith.constant 0 : i32
    %c0_i32_1 = arith.constant 0 : i32
    return %arg0, %c0_i32, %c0_i32_0 : i32, i32, i32
  }
  func.func @transform_4(%arg0: i32) -> (i32, i32, i32) {
    %c0_i32 = arith.constant 0 : i32
    %c0_i32_0 = arith.constant 0 : i32
    %c0_i32_1 = arith.constant 0 : i32
    return %arg0, %c0_i32, %c0_i32_0 : i32, i32, i32
  }
  func.func @transform_5(%arg0: i32) -> (i32, i32, i32) {
    %c0_i32 = arith.constant 0 : i32
    %c0_i32_0 = arith.constant 0 : i32
    %c0_i32_1 = arith.constant 0 : i32
    return %arg0, %c0_i32, %c0_i32_0 : i32, i32, i32
  }
  func.func @transform_6(%arg0: i32) -> (i32, i32, i32) {
    %c0_i32 = arith.constant 0 : i32
    %c0_i32_0 = arith.constant 0 : i32
    %c0_i32_1 = arith.constant 0 : i32
    return %arg0, %c0_i32, %c0_i32_0 : i32, i32, i32
  }
  func.func @transform_7(%arg0: i32) -> (i32, i32, i32) {
    %c0_i32 = arith.constant 0 : i32
    %c0_i32_0 = arith.constant 0 : i32
    %c0_i32_1 = arith.constant 0 : i32
    return %arg0, %c0_i32, %c0_i32_0 : i32, i32, i32
  }
  func.func @transform_8(%arg0: i32) -> (i32, i32, i32) {
    %c0_i32 = arith.constant 0 : i32
    %c0_i32_0 = arith.constant 0 : i32
    %c0_i32_1 = arith.constant 0 : i32
    return %arg0, %c0_i32, %c0_i32_0 : i32, i32, i32
  }
  func.func @transform_9(%arg0: i32) -> (i32, i32, i32, i32) {
    %c0_i32 = arith.constant 0 : i32
    %c0_i32_0 = arith.constant 0 : i32
    %c0_i32_1 = arith.constant 0 : i32
    %c0_i32_2 = arith.constant 0 : i32
    return %arg0, %c0_i32, %c0_i32_0, %c0_i32_1 : i32, i32, i32, i32
  }
}

</mosaic_0001>

<bundles_post_ra>
// kernel: tpu_custom_call.1
= control target key start
LH: loop header
LB: loop body
LE: loop exit
PB: predicated region body
PF: predicated region fallthrough
CT: control target
= control target key end

     0   :  { %14 = vsyncpa [#allocation4], 0  ;;  %s3842_s0 = inlined_call_operand.vmem [shape: f32[2,16,32], index: 0, kind: input, shape index: {}]   ;;  %s3843_s1 = inlined_call_operand.vmem [shape: f32[2,2,16,32], index: 1, kind: input, shape index: {}]   ;;  %s3844_s2 = inlined_call_operand.vmem [shape: f32[96,16], index: 2, kind: input, shape index: {}]   ;;  %s3845_s3 = inlined_call_operand.vmem [shape: f32[2,192,64], index: 3, kind: input, shape index: {}]   ;;  %s3846_s4 = inlined_call_operand.vmem [shape: f32[2,192,64], index: 4, kind: input, shape index: {}]   ;;  %s3847_s5 = inlined_call_operand.vmem [shape: f32[2,192,32], index: 5, kind: input, shape index: {}]   ;;  %s3848_s6 = inlined_call_operand.vmem [shape: f32[2,192,32], index: 6, kind: input, shape index: {}]   ;;  %s3849_s7 = inlined_call_operand.vmem [shape: f32[2,1,64], index: 7, kind: input, shape index: {}]   ;;  %s3850_s8 = inlined_call_operand.vmem [shape: f32[2,1,32], index: 8, kind: input, shape index: {}]   ;;  %s3851_s9 = inlined_call_operand.hbm [shape: f32[2,2,16,32], index: 9, kind: output, shape index: {}]  }
   0x1   :  { %16 = vsyncpa [#allocation4 + $0x1], 0  ;;  %s3025_s30 = smov 0   ;;  %s3027_s10 = smov 0  }
   0x2   :  { %s3029_s11 = smov 0   ;;  %s3031_s12 = smov 0  }
   0x3 LB: > { %3859 = sst [smem:[#allocation6_spill]] %s2954_s30  ;;  %s3046_s13 = sadd.s32 4294967295, %s2966_s12   ;;  %s2966_s12 = sphi %s3031_s12, %s3872_s12   ;;  %s2962_s11 = sphi %s3029_s11, %s3874_s11   ;;  %s2958_s10 = sphi %s3027_s10, %s3876_s10   ;;  %s2954_s30 = sphi %s3025_s30, %s3875_s30  }
   0x4   : > { %3860 = sst [smem:[#allocation7_spill]] %s2962_s11  ;;  %s2247_s14 = sadd.s32 4294967294, %s2966_s12  }
   0x5   : > { %3861 = sst [smem:[#allocation8_spill]] %s2966_s12  ;;  %s3050_s15 = sadd.s32 1, %s2966_s12  }
   0x6   : > { %3862 = sst [smem:[#allocation9_spill]] %s3050_s15  ;;  %s253_s16 = sadd.s32 1, %s2962_s11 }
   0x7   : > { %s250_s17 = ssub.s32 %s2966_s12, %s3050_s15  ;;  %p263_p0 = scmp.ne.s32.totalorder %s2962_s11, %s2958_s10 }
   0x8   : > { %p251_p1 = scmp.eq.s32.totalorder %s250_s17, 0  ;;  %p264_p2 = scmp.eq.s32.totalorder %s3046_s13, 1 }
   0x9   : > { %p269_p3 = scmp.ne.s32.totalorder %s2958_s10, %s2954_s30  ;;  %p270_p4 = scmp.eq.s32.totalorder %s2247_s14, 1 }
   0xa   : > { %s3061_s18 = scalar_select %p251_p1, %s2962_s11, %s253_s16  }
   0xb   : > { %p3063_p5 = por %p264_p2, %p263_p0  ;;  %p3067_p6 = por %p270_p4, %p269_p3 }
   0xc   : > { %3863 = sst [smem:[#allocation10_spill]] %s3061_s18  ;;  %p2250_p7 = scmp.ge.s32.totalorder %s2966_s12, 1 }
   0xd   : > { %s3865_s20 = scalar_select %p3067_p6, 1, 0 }
   0xe   : > { %p346_p8 = scmp.lt.s32.totalorder %s2966_s12, 3 }
   0xf   : > { %3866 = sst [smem:[#allocation11_spill]] %s3865_s20 }
  0x10   : > { %p347_p9 = pnand %p2250_p7, %p346_p8 }
  0x11   : > { %s3852_s21 = sand.u32 (!%p347_p9), 1, %s2958_s10   ;;  %p408_p10 = scmp.lt.s32.totalorder (!%p347_p9), %s3046_s13, 1 }
  0x12   : > { %350 = sbr.rel (%p347_p9) target bundleno = 1528 (0x5f8), region = 56  ;;  %s2251_s22 = sshll.u32 (!%p347_p9), %s3852_s21, 5 }
  0x13   : > { %s3115_s17 = scalar_lea.vmem (!%p347_p9), [#allocation3], %s2251_s22  ;;  %p2258_p11 = scmp.ne.s32.totalorder (!%p347_p9), %s3046_s13, 0 }
  0x19   : > { %s3078_s23 = scalar_select %p408_p10, %s3046_s13, 1 }
  0x1a   : > { %442 = sbr.rel (%p2258_p11) target bundleno = 33 (0x21), region = 60  ;;  %v443_v0 = vld [vmem:[%s3842_s0] sm:$0xff] (!%p2258_p11)  ;;  %vm447_vm0 = vcmask (!%p2258_p11), 261120   ;;  %v444_v1 = vld [vmem:[%s3842_s0 + $0x8] sm:$0xff] (!%p2258_p11)  ;;  %v445_v2 = vld [vmem:[%s3842_s0 + $0x10] sm:$0xff] (!%p2258_p11) }
  0x1b   : > { %s2359_s24 = sshll.u32 %s3078_s23, 5  ;;  %s2745_s25 = smul.u32 192, %s3078_s23  ;;  %448 = vst.msk [vmem:[#allocation2] sm:$0xff] (!%p2258_p11), %vm447_vm0, %v443_v0  ;;  %449 = vst.msk [vmem:[#allocation2 + $0x8] sm:$0xff] (!%p2258_p11), %vm447_vm0, %v444_v1  ;;  %v446_v3 = vld [vmem:[%s3842_s0 + $0x18] sm:$0xff] (!%p2258_p11) }
  0x1c   : > { %s3085_s28 = scalar_lea.vmem %s3843_s1, %s2359_s24  ;;  %s438_s18 = scalar_lea.vmem %s3850_s8, %s3078_s23  ;;  %450 = vst.msk [vmem:[#allocation2 + $0x10] sm:$0xff] (!%p2258_p11), %vm447_vm0, %v445_v2  ;;  %451 = vst.msk [vmem:[#allocation2 + $0x18] sm:$0xff] (!%p2258_p11), %vm447_vm0, %v446_v3 }
  0x1d   : > { %s3094_s21 = scalar_lea.vmem %s3845_s3, %s2745_s25  ;;  %s3099_s20 = scalar_lea.vmem %s3846_s4, %s2745_s25 }
  0x1e   : > { %s3104_s26 = scalar_lea.vmem %s3847_s5, %s2745_s25  ;;  %s3109_s29 = scalar_lea.vmem %s3848_s6, %s2745_s25 }
  0x21 PF: > { %vm472_vm1 = vcmask 130048   ;;  %v3133_v9 = vld [vmem:[%s3844_s2] sm:$0xff]  ;;  %v3142_v11 = vld [vmem:[%s3844_s2 + $0x8] sm:$0xff]  ;;  %v3153_v14 = vld [vmem:[%s3844_s2 + $0x10] sm:$0xff]  ;;  %v2968_v31 = vmov 0.0|0.0   ;;  %s2969_s30 = smov 32   ;;  %s3867_s24 = scalar_lea.vmem %s3849_s7, %s3078_s23 }
  0x22   : > { %v464_v4 = vld [vmem:[#allocation2] sm:$0xff]  ;;  %v465_v5 = vld [vmem:[#allocation2 + $0x8] sm:$0xff]  ;;  %2449 = vmatprep.mubr.msk.f32.mxu0 %vm472_vm1, %v3133_v9  ;;  %2471 = vmatprep.mubr.msk.f32.mxu1 %vm472_vm1, %v3133_v9  ;;  %v3158_v16 = vld [vmem:[%s3085_s28 + $0x10] sm:$0xff]  ;;  %s2970_s12 = smov 64   ;;  %vm669_vm2 = vcmask 523264   ;;  %vm666_vm3 = vcmask 261120  }
  0x23   : > { %v466_v6 = vld [vmem:[#allocation2 + $0x10] sm:$0xff]  ;;  %v2577_v7 = vpack.c.bf16 %v465_v5, %v464_v4  ;;  %v467_v8 = vld [vmem:[#allocation2 + $0x18] sm:$0xff]  ;;  %v3145_v12 = vld [vmem:[%s3085_s28] sm:$0xff]  ;;  %vm672_vm4 = vcmask 785408   ;;  %s2096_s23 = sadd.s32 1, %s3046_s13 }
  0x24   : > { %v2581_v10 = vpack.c.bf16 %v467_v8, %v466_v6  ;;  %v3148_v13 = vld [vmem:[%s3085_s28 + $0x8] sm:$0xff]  ;;  %v3161_v17 = vld [vmem:[%s3085_s28 + $0x18] sm:$0xff]  ;;  %v3181_v20 = vld [vmem:[%s3844_s2 + $0x20] sm:$0xff]  ;;  %p2353_p12 = scmp.ge.s32.totalorder %s2096_s23, 2 }
  0x25   : > { %2578 = vmatprep.subr.bf16.mxu0 %v2577_v7  ;;  %v2585_v15 = vpack.c.bf16 %v3148_v13, %v3145_v12  ;;  %v2589_v18 = vpack.c.bf16 %v3161_v17, %v3158_v16  ;;  %v3174_v19 = vld [vmem:[%s3844_s2 + $0x18] sm:$0xff]  ;;  %v3192_v21 = vld [vmem:[%s3844_s2 + $0x28] sm:$0xff]  ;;  %v3199_v22 = vld [vmem:[%s3844_s2 + $0x30] sm:$0xff] }
  0x26   : > { %2582 = vmatprep.subr.bf16.mxu1 %v2581_v10  ;;  %2580 = vmatpush3.bf16.msra.mxu0 %v2577_v7  ;;  %v3210_v23 = vld [vmem:[%s3844_s2 + $0x38] sm:$0xff]  ;;  %v3217_v24 = vld [vmem:[%s3844_s2 + $0x40] sm:$0xff]  ;;  %v3228_v25 = vld [vmem:[%s3844_s2 + $0x48] sm:$0xff] }
  0x27   : > { %2584 = vmatpush3.bf16.msra.mxu1 %v2581_v10  ;;  %2586 = vmatprep.subr.bf16.mxu0 %v2585_v15  ;;  %v3235_v26 = vld [vmem:[%s3844_s2 + $0x50] sm:$0xff]  ;;  %v3246_v27 = vld [vmem:[%s3844_s2 + $0x58] sm:$0xff]  ;;  %v1196_v28 = vld [vmem:[%s3099_s20] sm:$0xff] }
  0x28   : > { %2590 = vmatprep.subr.bf16.mxu1 %v2589_v18  ;;  %v1197_v29 = vld [vmem:[%s3099_s20 + $0x8] sm:$0xff]  ;;  %v1172_v30 = vld [vmem:[%s3094_s21] sm:$0xff]  ;;  %v1198_v34 = vld [vmem:[%s3099_s20 + $0x10] sm:$0xff] }
  0x29   : > { %2450 = vmatmul.mubr.msk.f32.vlgmr.msra.gmra.mrb[0].mxu0 %vm472_vm1, %v3142_v11  ;;  %v2594_v32 = vpack.c.bf16 %v1197_v29, %v1196_v28  ;;  %v1173_v33 = vld [vmem:[%s3094_s21 + $0x8] sm:$0xff]  ;;  %v1199_v35 = vld [vmem:[%s3099_s20 + $0x18] sm:$0xff]  ;;  %v1174_v37 = vld [vmem:[%s3094_s21 + $0x10] sm:$0xff] }
  0x2a   : > { %2472 = vmatmul.mubr.msk.f32.vlgmr.msra.gmra.mrb[0].mxu1 %vm472_vm1, %v3142_v11  ;;  %2452 = vmatprep.mubr.msk.f32.mxu0 %vm472_vm1, %v3153_v14  ;;  %v2630_v36 = vpack.c.bf16 %v1173_v33, %v1172_v30  ;;  %v1175_v38 = vld [vmem:[%s3094_s21 + $0x18] sm:$0xff]  ;;  %v2597_v39 = vpack.c.bf16 %v1199_v35, %v1198_v34  ;;  %v1200_v41 = vld [vmem:[%s3099_s20 + $0x20] sm:$0xff]  ;;  %v1201_v42 = vld [vmem:[%s3099_s20 + $0x28] sm:$0xff] }
  0x2b   : > { %2474 = vmatprep.mubr.msk.f32.mxu1 %vm472_vm1, %v3153_v14  ;;  %2588 = vmatpush3.bf16.msra.mxu0 %v2585_v15  ;;  %v2633_v40 = vpack.c.bf16 %v1175_v38, %v1174_v37  ;;  %v1176_v43 = vld [vmem:[%s3094_s21 + $0x20] sm:$0xff]  ;;  %v1177_v44 = vld [vmem:[%s3094_s21 + $0x28] sm:$0xff]  ;;  %v2600_v45 = vpack.c.bf16 %v1201_v42, %v1200_v41  ;;  %v1202_v47 = vld [vmem:[%s3099_s20 + $0x30] sm:$0xff] }
  0x2c   : > { %2592 = vmatpush3.bf16.msra.mxu1 %v2589_v18  ;;  %2593 = vmatprep.subr.bf16.mxu0 %v2968_v31  ;;  %v2636_v46 = vpack.c.bf16 %v1177_v44, %v1176_v43  ;;  %v1203_v48 = vld [vmem:[%s3099_s20 + $0x38] sm:$0xff]  ;;  %v1178_v49 = vld [vmem:[%s3094_s21 + $0x30] sm:$0xff]  ;;  %v1204_v53 = vld [vmem:[%s3099_s20 + $0x40] sm:$0xff] }
  0x2d   : > { %2453 = vmatmul.mubr.msk.f32.gmra.mrb[2].mxu0 %vm472_vm1, %v3174_v19  ;;  %2629 = vmatprep.subr.bf16.mxu1 %v2968_v31  ;;  %v1179_v50 = vld [vmem:[%s3094_s21 + $0x38] sm:$0xff]  ;;  %v2603_v51 = vpack.c.bf16 %v1203_v48, %v1202_v47  ;;  %v1205_v54 = vld [vmem:[%s3099_s20 + $0x48] sm:$0xff]  ;;  %v1180_v55 = vld [vmem:[%s3094_s21 + $0x40] sm:$0xff] }
  0x2e   : > { %2475 = vmatmul.mubr.msk.f32.gmra.mrb[2].mxu1 %vm472_vm1, %v3174_v19  ;;  %2455 = vmatprep.mubr.msk.f32.mxu0 %vm472_vm1, %v3181_v20  ;;  %v2639_v52 = vpack.c.bf16 %v1179_v50, %v1178_v49  ;;  %v1181_v56 = vld [vmem:[%s3094_s21 + $0x48] sm:$0xff]  ;;  %v2606_v57 = vpack.c.bf16 %v1205_v54, %v1204_v53  ;;  %v1206_v6 = vld [vmem:[%s3099_s20 + $0x50] sm:$0xff]  ;;  %v1207_v7 = vld [vmem:[%s3099_s20 + $0x58] sm:$0xff] }
  0x2f   : > { %2477 = vmatprep.mubr.msk.f32.mxu1 %vm472_vm1, %v3181_v20  ;;  %v2642_v58 = vpack.c.bf16 %v1181_v56, %v1180_v55  ;;  %v1182_v8 = vld [vmem:[%s3094_s21 + $0x50] sm:$0xff]  ;;  %v2609_v15 = vpack.c.bf16 %v1207_v7, %v1206_v6  ;;  %v1183_v18 = vld [vmem:[%s3094_s21 + $0x58] sm:$0xff]  ;;  %v1208_v33 = vld [vmem:[%s3099_s20 + $0x60] sm:$0xff] }
  0x30   : > { %v2645_v28 = vpack.c.bf16 %v1183_v18, %v1182_v8  ;;  %v1209_v34 = vld [vmem:[%s3099_s20 + $0x68] sm:$0xff]  ;;  %v1184_v35 = vld [vmem:[%s3094_s21 + $0x60] sm:$0xff]  ;;  %v1210_v43 = vld [vmem:[%s3099_s20 + $0x70] sm:$0xff] }
  0x31   : > { %2456 = vmatmul.mubr.msk.f32.gmra.mrb[4].mxu0 %vm472_vm1, %v3192_v21  ;;  %v2612_v37 = vpack.c.bf16 %v1209_v34, %v1208_v33  ;;  %v1185_v38 = vld [vmem:[%s3094_s21 + $0x68] sm:$0xff]  ;;  %v1211_v44 = vld [vmem:[%s3099_s20 + $0x78] sm:$0xff]  ;;  %v1212_v53 = vld [vmem:[%s3099_s20 + $0x80] sm:$0xff] }
  0x32   : > { %2478 = vmatmul.mubr.msk.f32.gmra.mrb[4].mxu1 %vm472_vm1, %v3192_v21  ;;  %2458 = vmatprep.mubr.msk.f32.mxu0 %vm472_vm1, %v3199_v22  ;;  %v2615_v47 = vpack.c.bf16 %v1211_v44, %v1210_v43  ;;  %v1187_v48 = vld [vmem:[%s3094_s21 + $0x78] sm:$0xff]  ;;  %v1213_v54 = vld [vmem:[%s3099_s20 + $0x88] sm:$0xff]  ;;  %v1188_v55 = vld [vmem:[%s3094_s21 + $0x80] sm:$0xff] }
  0x33   : > { %2480 = vmatprep.mubr.msk.f32.mxu1 %vm472_vm1, %v3199_v22  ;;  %v1214_v18 = vld [vmem:[%s3099_s20 + $0x90] sm:$0xff] }
  0x34   : > { %v1190_v33 = vld [vmem:[%s3094_s21 + $0x90] sm:$0xff] }
  0x35   : > { %2459 = vmatmul.mubr.msk.f32.gmra.mrb[6].mxu0 %vm472_vm1, %v3210_v23 }
  0x36   : > { %2481 = vmatmul.mubr.msk.f32.gmra.mrb[6].mxu1 %vm472_vm1, %v3210_v23  ;;  %2461 = vmatprep.mubr.msk.f32.mxu0 %vm472_vm1, %v3217_v24 }
  0x37   : > { %2483 = vmatprep.mubr.msk.f32.mxu1 %vm472_vm1, %v3217_v24 }
  0x39   : > { %2462 = vmatmul.mubr.msk.f32.gmra.mrb[8].mxu0 %vm472_vm1, %v3228_v25 }
  0x3a   : > { %2484 = vmatmul.mubr.msk.f32.gmra.mrb[8].mxu1 %vm472_vm1, %v3228_v25  ;;  %2464 = vmatprep.mubr.msk.f32.mxu0 %vm472_vm1, %v3235_v26 }
  0x3b   : > { %2486 = vmatprep.mubr.msk.f32.mxu1 %vm472_vm1, %v3235_v26 }
  0x3d   : > { %2465 = vmatmul.mubr.msk.f32.gmra.mrb[10].mxu0 %vm472_vm1, %v3246_v27 }
  0x3e   : > { %2487 = vmatmul.mubr.msk.f32.gmra.mrb[10].mxu1 %vm472_vm1, %v3246_v27  ;;  %2493 = vmatprep.mubr.msk.f32.mxu0 %vm472_vm1, %v3133_v9 }
  0x3f   : > { %2515 = vmatprep.mubr.msk.f32.mxu1 %vm472_vm1, %v3133_v9 }
  0x41   : > { %2494 = vmatmul.mubr.msk.f32.vlgmr.msra.gmra.mrb[12].mxu0 %vm472_vm1, %v3142_v11 }
  0x42   : > { %2516 = vmatmul.mubr.msk.f32.vlgmr.msra.gmra.mrb[12].mxu1 %vm472_vm1, %v3142_v11  ;;  %2496 = vmatprep.mubr.msk.f32.mxu0 %vm472_vm1, %v3153_v14 }
  0x43   : > { %2518 = vmatprep.mubr.msk.f32.mxu1 %vm472_vm1, %v3153_v14  ;;  %2595 = vmatpush1.bf16.msra.mxu0 %v2594_v32 }
  0x44   : > { %2631 = vmatpush1.bf16.msra.mxu1 %v2630_v36  ;;  %2596 = vmatprep.subr.bf16.mxu0 %v2968_v31 }
  0x45   : > { %2497 = vmatmul.mubr.msk.f32.gmra.mrb[14].mxu0 %vm472_vm1, %v3174_v19  ;;  %2632 = vmatprep.subr.bf16.mxu1 %v2968_v31 }
  0x46   : > { %2519 = vmatmul.mubr.msk.f32.gmra.mrb[14].mxu1 %vm472_vm1, %v3174_v19  ;;  %2499 = vmatprep.mubr.msk.f32.mxu0 %vm472_vm1, %v3181_v20 }
  0x47   : > { %2521 = vmatprep.mubr.msk.f32.mxu1 %vm472_vm1, %v3181_v20  ;;  %2598 = vmatpush1.bf16.msra.mxu0 %v2597_v39  ;;  %v2648_v39 = vpack.c.bf16 %v1185_v38, %v1184_v35 }
  0x48   : > { %2634 = vmatpush1.bf16.msra.mxu1 %v2633_v40  ;;  %2599 = vmatprep.subr.bf16.mxu0 %v2968_v31 }
  0x49   : > { %2500 = vmatmul.mubr.msk.f32.gmra.mrb[16].mxu0 %vm472_vm1, %v3192_v21  ;;  %2635 = vmatprep.subr.bf16.mxu1 %v2968_v31 }
  0x4a   : > { %2522 = vmatmul.mubr.msk.f32.gmra.mrb[16].mxu1 %vm472_vm1, %v3192_v21  ;;  %2502 = vmatprep.mubr.msk.f32.mxu0 %vm472_vm1, %v3199_v22 }
  0x4b   : > { %2524 = vmatprep.mubr.msk.f32.mxu1 %vm472_vm1, %v3199_v22  ;;  %2601 = vmatpush1.bf16.msra.mxu0 %v2600_v45  ;;  %v1186_v45 = vld [vmem:[%s3094_s21 + $0x70] sm:$0xff] }
  0x4c   : > { %2637 = vmatpush1.bf16.msra.mxu1 %v2636_v46  ;;  %2602 = vmatprep.subr.bf16.mxu0 %v2968_v31  ;;  %v2651_v49 = vpack.c.bf16 %v1187_v48, %v1186_v45  ;;  %v1217_v48 = vld [vmem:[%s3099_s20 + $0xa8] sm:$0xff] }
  0x4d   : > { %2503 = vmatmul.mubr.msk.f32.gmra.mrb[18].mxu0 %vm472_vm1, %v3210_v23  ;;  %2638 = vmatprep.subr.bf16.mxu1 %v2968_v31 }
  0x4e   : > { %2525 = vmatmul.mubr.msk.f32.gmra.mrb[18].mxu1 %vm472_vm1, %v3210_v23  ;;  %2505 = vmatprep.mubr.msk.f32.mxu0 %vm472_vm1, %v3217_v24 }
  0x4f   : > { %2527 = vmatprep.mubr.msk.f32.mxu1 %vm472_vm1, %v3217_v24  ;;  %2604 = vmatpush1.bf16.msra.mxu0 %v2603_v51 }
  0x50   : > { %2640 = vmatpush1.bf16.msra.mxu1 %v2639_v52  ;;  %2605 = vmatprep.subr.bf16.mxu0 %v2968_v31 }
  0x51   : > { %2506 = vmatmul.mubr.msk.f32.gmra.mrb[20].mxu0 %vm472_vm1, %v3228_v25  ;;  %2641 = vmatprep.subr.bf16.mxu1 %v2968_v31 }
  0x52   : > { %2508 = vmatprep.mubr.msk.f32.mxu0 %vm472_vm1, %v3235_v26  ;;  %2528 = vmatmul.mubr.msk.f32.gmra.mrb[20].mxu1 %vm472_vm1, %v3228_v25 }
  0x53   : > { %2530 = vmatprep.mubr.msk.f32.mxu1 %vm472_vm1, %v3235_v26  ;;  %2607 = vmatpush1.bf16.msra.mxu0 %v2606_v57  ;;  %v2618_v57 = vpack.c.bf16 %v1213_v54, %v1212_v53 }
  0x54   : > { %2643 = vmatpush1.bf16.msra.mxu1 %v2642_v58  ;;  %2608 = vmatprep.subr.bf16.mxu0 %v2968_v31  ;;  %v1189_v58 = vld [vmem:[%s3094_s21 + $0x88] sm:$0xff] }
  0x55   : > { %2509 = vmatmul.mubr.msk.f32.gmra.mrb[22].mxu0 %vm472_vm1, %v3246_v27  ;;  %2644 = vmatprep.subr.bf16.mxu1 %v2968_v31  ;;  %v2654_v6 = vpack.c.bf16 %v1189_v58, %v1188_v55 }
  0x56   : > { %2531 = vmatmul.mubr.msk.f32.gmra.mrb[22].mxu1 %vm472_vm1, %v3246_v27 }
  0x57   : > { %2610 = vmatpush1.bf16.msra.mxu0 %v2609_v15 }
  0x58   : > { %2646 = vmatpush1.bf16.msra.mxu1 %v2645_v28  ;;  %2611 = vmatprep.subr.bf16.mxu0 %v2968_v31  ;;  %v1215_v28 = vld [vmem:[%s3099_s20 + $0x98] sm:$0xff] }
  0x59   : > { %2647 = vmatprep.subr.bf16.mxu1 %v2968_v31  ;;  %v2621_v35 = vpack.c.bf16 %v1215_v28, %v1214_v18  ;;  %v1219_v18 = vld [vmem:[%s3099_s20 + $0xb8] sm:$0xff]  ;;  %v1194_v28 = vld [vmem:[%s3094_s21 + $0xb0] sm:$0xff] }
  0x5b   : > { %2613 = vmatpush1.bf16.msra.mxu0 %v2612_v37  ;;  %v1191_v37 = vld [vmem:[%s3094_s21 + $0x98] sm:$0xff] }
  0x5c   : > { %2649 = vmatpush1.bf16.msra.mxu1 %v2648_v39  ;;  %2614 = vmatprep.subr.bf16.mxu0 %v2968_v31  ;;  %v2657_v38 = vpack.c.bf16 %v1191_v37, %v1190_v33 }
  0x5d   : > { %2650 = vmatprep.subr.bf16.mxu1 %v2968_v31 }
  0x5f   : > { %2616 = vmatpush1.bf16.msra.mxu0 %v2615_v47  ;;  %v1216_v47 = vld [vmem:[%s3099_s20 + $0xa0] sm:$0xff] }
  0x60   : > { %2652 = vmatpush1.bf16.msra.mxu1 %v2651_v49  ;;  %2617 = vmatprep.subr.bf16.mxu0 %v2968_v31  ;;  %v1192_v49 = vld [vmem:[%s3094_s21 + $0xa0] sm:$0xff]  ;;  %v2624_v54 = vpack.c.bf16 %v1217_v48, %v1216_v47 }
  0x61   : > { %2653 = vmatprep.subr.bf16.mxu1 %v2968_v31 }
  0x63   : > { %2619 = vmatpush1.bf16.msra.mxu0 %v2618_v57 }
  0x64   : > { %2655 = vmatpush1.bf16.msra.mxu1 %v2654_v6  ;;  %2620 = vmatprep.subr.bf16.mxu0 %v2968_v31  ;;  %v1218_v6 = vld [vmem:[%s3099_s20 + $0xb0] sm:$0xff]  ;;  %s2971_s20 = smov 96  }
  0x65   : > { %2656 = vmatprep.subr.bf16.mxu1 %v2968_v31  ;;  %v2627_v37 = vpack.c.bf16 %v1219_v18, %v1218_v6 }
  0x67   : > { %2622 = vmatpush1.bf16.msra.mxu0 %v2621_v35 }
  0x68   : > { %2658 = vmatpush1.bf16.msra.mxu1 %v2657_v38  ;;  %2623 = vmatprep.subr.bf16.mxu0 %v2968_v31  ;;  %v1195_v38 = vld [vmem:[%s3094_s21 + $0xb8] sm:$0xff] }
  0x69   : > { %2659 = vmatprep.subr.bf16.mxu1 %v2968_v31 }
  0x6b   : > { %2625 = vmatpush1.bf16.msra.mxu0 %v2624_v54 }
  0x6c   : > { %2626 = vmatprep.subr.bf16.mxu0 %v2968_v31 }
  0x6f   : > { %2628 = vmatpush1.bf16.msra.mxu0 %v2627_v37 }
  0xfc   : > { %v3334_v59 = vpop.f32.mrb[0].mxu0 }
  0xfd   : > { %v3336_v60 = vpop.f32.mrb[1].mxu0  ;;  %v3338_v61 = vpop.f32.mrb[0].mxu1 }
  0xfe   : > { %v3340_v62 = vpop.f32.mrb[1].mxu1 }
 0x100   : > { %v3342_v63 = vpop.f32.mrb[2].mxu0 }
 0x101   : > { %v3344_v0 = vpop.f32.mrb[3].mxu0  ;;  %v3346_v1 = vpop.f32.mrb[2].mxu1 }
 0x102   : > { %v3348_v2 = vpop.f32.mrb[3].mxu1 }
 0x104   : > { %v3350_v3 = vpop.f32.mrb[4].mxu0 }
 0x105   : > { %v3352_v4 = vpop.f32.mrb[5].mxu0  ;;  %v3354_v5 = vpop.f32.mrb[4].mxu1 }
 0x106   : > { %v3359_v10 = vpop.f32.mrb[5].mxu1 }
 0x108   : > { %v3362_v29 = vpop.f32.mrb[6].mxu0 }
 0x109   : > { %v3364_v30 = vpop.f32.mrb[7].mxu0  ;;  %v3366_v32 = vpop.f32.mrb[6].mxu1 }
 0x10a   : > { %v3372_v36 = vpop.f32.mrb[7].mxu1 }
 0x10c   : > { %v3376_v40 = vpop.f32.mrb[8].mxu0 }
 0x10d   : > { %v3378_v41 = vpop.f32.mrb[9].mxu0  ;;  %v3380_v42 = vpop.f32.mrb[8].mxu1 }
 0x10e   : > { %v3386_v46 = vpop.f32.mrb[9].mxu1 }
 0x110   : > { %v2466_v50 = vpop.f32.mrb[10].mxu0 }
 0x111   : > { %v3390_v51 = vpop.f32.mrb[10].mxu1  ;;  %662 = vrot.lane.b32.xlu1 %v2466_v50, %s2969_s30  ;;  %v625_v52 = vpop.f32.mrb[11].mxu0 }
 0x112   : > { %v793_v56 = vpop.f32.mrb[11].mxu1 }
 0x113   : > { %828 = vrot.lane.b32.xlu0 %v793_v56, %s2969_s30 }
 0x114   : > { %v3400_v7 = vpop.f32.mrb[12].mxu0 }
 0x115   : > { %660 = vrot.lane.b32.xlu1 %v625_v52, %s2969_s30  ;;  %v3403_v8 = vpop.f32.mrb[13].mxu0  ;;  %v3405_v15 = vpop.f32.mrb[12].mxu1 }
 0x116   : > { %v3410_v34 = vpop.f32.mrb[13].mxu1 }
 0x118   : > { %v2498_v39 = vpop.f32.mrb[14].mxu0 }
 0x119   : > { %v2791_v43 = vpack.i.bf16 %v2498_v39, %v3342_v63  ;;  %v2520_v44 = vpop.f32.mrb[14].mxu1  ;;  %v918_v45 = vpop.f32.mrb[15].mxu0  ;;  %v1193_v63 = vld [vmem:[%s3094_s21 + $0xa8] sm:$0xff] }
 0x11a   : > { %v2836_v50 = vpack.i.bf16 %v2520_v44, %v3346_v1  ;;  %v2796_v52 = vpack.i.bf16 %v918_v45, %v3344_v0  ;;  %v1083_v53 = vpop.f32.mrb[15].mxu1  ;;  %v2660_v56 = vpack.c.bf16 %v1193_v63, %v1192_v49 }
 0x11b   : > { %v2801_v55 = vpack.i.bf16 %v1083_v53, %v3348_v2  ;;  %2792 = vrot.lane.b32.xlu1 %v2791_v43, %s2969_s30  ;;  %v2663_v43 = vpack.c.bf16 %v1195_v38, %v1194_v28 }
 0x11c   : > { %2797 = vrot.lane.b32.xlu0 %v2796_v52, %s2969_s30  ;;  %v2501_v57 = vpop.f32.mrb[16].mxu0  ;;  %2661 = vmatpush1.bf16.msra.mxu1 %v2660_v56 }
 0x11d   : > { %v2523_v1 = vpop.f32.mrb[16].mxu1  ;;  %v2806_v0 = vpack.i.bf16 %v2501_v57, %v3350_v3  ;;  %v928_v58 = vpop.f32.mrb[17].mxu0  ;;  %2662 = vmatprep.subr.bf16.mxu1 %v2968_v31 }
 0x11e   : > { %v2841_v2 = vpack.i.bf16 %v2523_v1, %v3354_v5  ;;  %v2811_v33 = vpack.i.bf16 %v928_v58, %v3352_v4  ;;  %v1093_v35 = vpop.f32.mrb[17].mxu1 }
 0x11f   : > { %v2816_v39 = vpack.i.bf16 %v1093_v35, %v3359_v10 }
 0x120   : > { %2802 = vrot.lane.b32.xlu0 %v2801_v55, %s2969_s30  ;;  %v2504_v3 = vpop.f32.mrb[18].mxu0  ;;  %2664 = vmatpush1.bf16.msra.mxu1 %v2663_v43 }
 0x121   : > { %v2526_v44 = vpop.f32.mrb[18].mxu1  ;;  %2817 = vrot.lane.b32.xlu1 %v2816_v39, %s2970_s12  ;;  %v2821_v5 = vpack.i.bf16 %v2504_v3, %v3362_v29  ;;  %v938_v45 = vpop.f32.mrb[19].mxu0 }
 0x122   : > { %v2846_v4 = vpack.i.bf16 %v2526_v44, %v3366_v32  ;;  %v2826_v47 = vpack.i.bf16 %v938_v45, %v3364_v30  ;;  %v1103_v48 = vpop.f32.mrb[19].mxu1 }
 0x123   : > { %v2831_v10 = vpack.i.bf16 %v1103_v48, %v3372_v36 }
 0x124   : > { %2807 = vrot.lane.b32.xlu0 %v2806_v0, %s2970_s12  ;;  %v3444_v49 = vpop.f32.mrb[20].mxu0 }
 0x125   : > { %2822 = vrot.lane.b32.xlu1 %v2821_v5, %s2971_s20  ;;  %v948_v52 = vpop.f32.mrb[21].mxu0  ;;  %v3447_v53 = vpop.f32.mrb[20].mxu1 }
 0x126   : > { %v3449_v29 = vpop.f32.mrb[21].mxu1 }
 0x128   : > { %2812 = vrot.lane.b32.xlu0 %v2811_v33, %s2970_s12  ;;  %v2510_v32 = vpop.f32.mrb[22].mxu0 }
 0x129   : > { %v958_v54 = vpop.f32.mrb[23].mxu0  ;;  %v2532_v30 = vpop.f32.mrb[22].mxu1 }
 0x12a   : > { %993 = vrot.lane.b32.xlu1 %v958_v54, %s2969_s30  ;;  %v1123_v36 = vpop.f32.mrb[23].mxu1 }
 0x12c   : > { %2827 = vrot.lane.b32.xlu0 %v2826_v47, %s2971_s20 }
 0x12e   : > { %2837 = vrot.lane.b32.xlu1 %v2836_v50, %s2969_s30 }
 0x130   : > { %2832 = vrot.lane.b32.xlu0 %v2831_v10, %s2971_s20 }
 0x132   : > { %1158 = vrot.lane.b32.xlu1 %v1123_v36, %s2969_s30 }
 0x134   : > { %995 = vrot.lane.b32.xlu0 %v2510_v32, %s2969_s30 }
 0x136   : > { %830 = vrot.lane.b32.xlu1 %v3390_v51, %s2969_s30 }
 0x138   : > { %2842 = vrot.lane.b32.xlu0 %v2841_v2, %s2970_s12 }
 0x13a   : > { %2847 = vrot.lane.b32.xlu1 %v2846_v4, %s2971_s20 }
 0x13c   : > { %1160 = vrot.lane.b32.xlu0 %v2532_v30, %s2969_s30 }
 0x183   : > { %v663_v63 = vpop.permute.xlu1 %662 }
 0x185   : > { %v829_v56 = vpop.permute.xlu0 %828 }
 0x187   : > { %v661_v55 = vpop.permute.xlu1 %660 }
 0x188   : > { %v3465_v50 = vsel %vm666_vm3, %v3378_v41, %v661_v55 }
 0x189   : > { %2311 = vmatprep.mubr.msk.f32.mxu1 %vm669_vm2, %v3465_v50 }
 0x18d   : > { %v2793_v57 = vpop.permute.xlu1 %2792 }
 0x18e   : > { %v2798_v51 = vpop.permute.xlu0 %2797  ;;  %v2794_v33 = vunpack.i.l.bf16 %v2793_v57  ;;  %v2795_v39 = vunpack.i.h.bf16 %v2793_v57 }
 0x18f   : > { %v2800_v28 = vunpack.i.h.bf16 %v2798_v51  ;;  %v2799_v2 = vunpack.i.l.bf16 %v2798_v51 }
 0x190   : > { %v668_v32 = vsel %vm666_vm3, %v3334_v59, %v2794_v33 }
 0x191   : > { %v999_v44 = vsel %vm666_vm3, %v3403_v8, %v2800_v28  ;;  %v667_v5 = vsel %vm666_vm3, %v3336_v60, %v2799_v2  ;;  %v3487_v60 = vsel %vm666_vm3, %v3376_v40, %v663_v63  ;;  %v1000_v28 = vsel %vm666_vm3, %v3400_v7, %v2795_v39 }
 0x192   : > { %v2803_v1 = vpop.permute.xlu0 %2802 }
 0x193   : > { %v3469_v0 = vpop.permute.xlu1 %2817  ;;  %v2804_v47 = vunpack.i.l.bf16 %v2803_v1  ;;  %v2805_v59 = vunpack.i.h.bf16 %v2803_v1  ;;  %v3504_v1 = vsel %vm666_vm3, %v3386_v46, %v829_v56 }
 0x194   : > { %v2819_v51 = vunpack.i.l.bf16 %v3469_v0 }
 0x195   : > { %v834_v40 = vsel %vm666_vm3, %v3340_v62, %v2804_v47 }
 0x196   : > { %v2808_v58 = vpop.permute.xlu0 %2807  ;;  %v836_v62 = vsel %vm669_vm2, %v834_v40, %v2819_v51 }
 0x197   : > { %v2823_v6 = vpop.permute.xlu1 %2822  ;;  %v2809_v43 = vunpack.i.l.bf16 %v2808_v58  ;;  %v2810_v54 = vunpack.i.h.bf16 %v2808_v58 }
 0x198   : > { %v2824_v30 = vunpack.i.l.bf16 %v2823_v6  ;;  %v2825_v58 = vunpack.i.h.bf16 %v2823_v6 }
 0x199   : > { %v671_v57 = vsel %vm669_vm2, %v668_v32, %v2809_v43  ;;  %v1002_v33 = vsel %vm669_vm2, %v1000_v28, %v2810_v54 }
 0x19a   : > { %v2813_v18 = vpop.permute.xlu0 %2812  ;;  %v3499_v2 = vsel %vm672_vm4, %v671_v57, %v2824_v30  ;;  %v1004_v39 = vsel %vm672_vm4, %v1002_v33, %v2825_v58 }
 0x19b   : > { %v2815_v35 = vunpack.i.h.bf16 %v2813_v18  ;;  %v2814_v37 = vunpack.i.l.bf16 %v2813_v18 }
 0x19c   : > { %v994_v38 = vpop.permute.xlu1 %993 }
 0x19d   : > { %v1005_v41 = vsel %vm666_vm3, %v948_v52, %v994_v38  ;;  %v1001_v48 = vsel %vm669_vm2, %v999_v44, %v2815_v35  ;;  %v670_v10 = vsel %vm669_vm2, %v667_v5, %v2814_v37  ;;  %v2820_v35 = vunpack.i.h.bf16 %v3469_v0 }
 0x19e   : > { %v2828_v3 = vpop.permute.xlu0 %2827  ;;  %2307 = vmatprep.mubr.msk.f32.mxu0 %vm669_vm2, %v1005_v41  ;;  %v1164_v37 = vsel %vm666_vm3, %v3410_v34, %v2805_v59 }
 0x19f   : > { %v2830_v45 = vunpack.i.h.bf16 %v2828_v3  ;;  %v2829_v4 = vunpack.i.l.bf16 %v2828_v3 }
 0x1a0   : > { %v2838_v52 = vpop.permute.xlu1 %2837 }
 0x1a1   : > { %v1003_v36 = vsel %vm672_vm4, %v1001_v48, %v2830_v45  ;;  %v3483_v8 = vsel %vm672_vm4, %v670_v10, %v2829_v4  ;;  %v2840_v38 = vunpack.i.h.bf16 %v2838_v52  ;;  %v2839_v41 = vunpack.i.l.bf16 %v2838_v52 }
 0x1a2   : > { %v2833_v55 = vpop.permute.xlu0 %2832  ;;  %1297 = vmatmul.mubr.f32.vlgmr.msra.gmra.mrb[24].mxu0 %v1003_v36  ;;  %1394 = vmatmul.mubr.f32.vlgmr.msra.gmra.mrb[24].mxu1 %v3483_v8 }
 0x1a3   : > { %2312 = vmatprep.mubr.msk.f32.mxu1 %vm669_vm2, %v3487_v60  ;;  %v2834_v63 = vunpack.i.l.bf16 %v2833_v55  ;;  %v2835_v46 = vunpack.i.h.bf16 %v2833_v55  ;;  %v835_v45 = vsel %vm666_vm3, %v3338_v61, %v2839_v41  ;;  %v1165_v4 = vsel %vm666_vm3, %v3405_v15, %v2840_v38 }
 0x1a4   : > { %v1159_v18 = vpop.permute.xlu1 %1158 }
 0x1a5   : > { %v1170_v0 = vsel %vm666_vm3, %v3449_v29, %v1159_v18  ;;  %v3524_v43 = vsel %vm672_vm4, %v836_v62, %v2834_v63  ;;  %v1166_v29 = vsel %vm669_vm2, %v1164_v37, %v2820_v35 }
 0x1a6   : > { %1399 = vmatmul.mubr.f32.gmra.mrb[26].mxu1 %v3499_v2  ;;  %v996_v6 = vpop.permute.xlu0 %995 }
 0x1a7   : > { %v1006_v7 = vsel %vm666_vm3, %v3444_v49, %v996_v6  ;;  %2313 = vmatprep.mubr.msk.f32.mxu1 %vm669_vm2, %v3504_v1 }
 0x1a8   : > { %2308 = vmatprep.mubr.msk.f32.mxu0 %vm669_vm2, %v1006_v7  ;;  %v831_v56 = vpop.permute.xlu1 %830 }
 0x1a9   : > { %v3521_v49 = vsel %vm666_vm3, %v3380_v42, %v831_v56  ;;  %1302 = vmatmul.mubr.f32.gmra.mrb[26].mxu0 %v1004_v39  ;;  %v1168_v42 = vsel %vm672_vm4, %v1166_v29, %v2835_v46 }
 0x1aa   : > { %1404 = vmatmul.mubr.f32.gmra.mrb[28].mxu1 %v3524_v43  ;;  %v2843_v34 = vpop.permute.xlu0 %2842  ;;  %2309 = vmatprep.mubr.msk.f32.mxu0 %vm669_vm2, %v1170_v0 }
 0x1ab   : > { %v2845_v3 = vunpack.i.h.bf16 %v2843_v34  ;;  %v2844_v44 = vunpack.i.l.bf16 %v2843_v34  ;;  %2314 = vmatprep.mubr.msk.f32.mxu1 %vm669_vm2, %v3521_v49 }
 0x1ac   : > { %v2848_v5 = vpop.permute.xlu1 %2847 }
 0x1ad   : > { %v2850_v47 = vunpack.i.h.bf16 %v2848_v5  ;;  %v2849_v48 = vunpack.i.l.bf16 %v2848_v5  ;;  %1307 = vmatmul.mubr.f32.gmra.mrb[28].mxu0 %v1168_v42  ;;  %v837_v10 = vsel %vm669_vm2, %v835_v45, %v2844_v44  ;;  %v1167_v52 = vsel %vm669_vm2, %v1165_v4, %v2845_v3 }
 0x1ae   : > { %v1161_v32 = vpop.permute.xlu0 %1160 }
 0x1af   : > { %v1171_v54 = vsel %vm666_vm3, %v3447_v53, %v1161_v32  ;;  %v3541_v30 = vsel %vm672_vm4, %v837_v10, %v2849_v48  ;;  %v1169_v61 = vsel %vm672_vm4, %v1167_v52, %v2850_v47  ;;  %v2315_v53 = vld [vmem:[%s3867_s24] ss:$0 sm:$0xff] }
 0x1b0   : > { %2310 = vmatprep.mubr.msk.f32.mxu0 %vm669_vm2, %v1171_v54  ;;  %1409 = vmatmul.mubr.f32.gmra.mrb[30].mxu1 %v3541_v30 }
 0x1b1   : > { %1312 = vmatmul.mubr.f32.gmra.mrb[30].mxu0 %v1169_v61  ;;  %2559 = vmatprep.mubr.msk.f32.mxu1 %vm472_vm1, %v3133_v9 }
 0x1b2   : > { %2537 = vmatprep.mubr.msk.f32.mxu0 %vm472_vm1, %v3133_v9 }
 0x275   : > { %v1298_v15 = vpop.f32.mrb[24].mxu0  ;;  %v1395_v36 = vpop.f32.mrb[24].mxu1 }
 0x276   : > { %v1396_v55 = vadd.f32 %v1395_v36, %v1298_v15  ;;  %v1300_v57 = vpop.f32.mrb[25].mxu0  ;;  %v1397_v51 = vpop.f32.mrb[25].mxu1 }
 0x277   : > { %v1783_v51 = vld [vmem:[%s3104_s26] sm:$0xff] }
 0x278   : > { %v1421_v59 = vadd.f32 %v2315_v53, %v1396_v55 }
 0x279   : > { %v1400_v58 = vpop.f32.mrb[26].mxu1 }
 0x27a   : > { %v2316_v18 = vmul.f32 -1.442695, %v1421_v59  ;;  %v1402_v28 = vpop.f32.mrb[27].mxu1  ;;  %v1784_v59 = vld [vmem:[%s3104_s26 + $0x8] sm:$0xff] }
 0x27b   : > { %v1787_v28 = vld [vmem:[%s3104_s26 + $0x20] sm:$0xff] }
 0x27c   : > { %v1303_v40 = vpop.f32.mrb[26].mxu0  ;;  %2876 = vpow2.f32 %v2316_v18 }
 0x27d   : > { %v1401_v63 = vadd.f32 %v1400_v58, %v1303_v40  ;;  %v1305_v33 = vpop.f32.mrb[27].mxu0  ;;  %v1405_v6 = vpop.f32.mrb[28].mxu1  ;;  %v1786_v58 = vld [vmem:[%s3104_s26 + $0x18] sm:$0xff]  ;;  %v1788_v40 = vld [vmem:[%s3104_s26 + $0x28] sm:$0xff] }
 0x27e   : > { %v1407_v9 = vpop.f32.mrb[29].mxu1  ;;  %v1792_v33 = vld [vmem:[%s3104_s26 + $0x48] sm:$0xff] }
 0x27f   : > { %v1422_v35 = vadd.f32 %v2315_v53, %v1401_v63  ;;  %v1790_v63 = vld [vmem:[%s3104_s26 + $0x38] sm:$0xff]  ;;  %v1796_v9 = vld [vmem:[%s3104_s26 + $0x68] sm:$0xff] }
 0x280   : > { %v1308_v7 = vpop.f32.mrb[28].mxu0 }
 0x281   : > { %v2317_v62 = vmul.f32 -1.442695, %v1422_v35  ;;  %v1406_v37 = vadd.f32 %v1405_v6, %v1308_v7  ;;  %v1310_v38 = vpop.f32.mrb[29].mxu0  ;;  %v1794_v6 = vld [vmem:[%s3104_s26 + $0x58] sm:$0xff] }
 0x282   : > { %v1798_v35 = vld [vmem:[%s3104_s26 + $0x78] sm:$0xff] }
 0x283   : > { %2878 = vpow2.f32 %v2317_v62  ;;  %v1423_v41 = vadd.f32 %v2315_v53, %v1406_v37  ;;  %v1410_v46 = vpop.f32.mrb[30].mxu1  ;;  %v1799_v62 = vld [vmem:[%s3104_s26 + $0x80] sm:$0xff]  ;;  %v1802_v38 = vld [vmem:[%s3104_s26 + $0x98] sm:$0xff] }
 0x284   : > { %v1313_v56 = vpop.f32.mrb[30].mxu0  ;;  %v1412_v39 = vpop.f32.mrb[31].mxu1 }
 0x285   : > { %v2318_v0 = vmul.f32 -1.442695, %v1423_v41  ;;  %v1411_v34 = vadd.f32 %v1410_v46, %v1313_v56  ;;  %v1315_v3 = vpop.f32.mrb[31].mxu0  ;;  %v1803_v46 = vld [vmem:[%s3104_s26 + $0xa0] sm:$0xff]  ;;  %v1804_v56 = vld [vmem:[%s3104_s26 + $0xa8] sm:$0xff] }
 0x286   : > { %v2877_v44 = vpop.eup %2876  ;;  %v2740_v39 = vpack.c.bf16 %v1804_v56, %v1803_v46 }
 0x287   : > { %2880 = vpow2.f32 %v2318_v0  ;;  %v1424_v29 = vadd.f32 %v2315_v53, %v1411_v34  ;;  %v1437_v42 = vadd.f32 1.0, %v2877_v44  ;;  %v1805_v0 = vld [vmem:[%s3104_s26 + $0xb0] sm:$0xff]  ;;  %v1806_v34 = vld [vmem:[%s3104_s26 + $0xb8] sm:$0xff]  ;;  %v1807_v44 = vld [vmem:[%s3109_s29] sm:$0xff] }
 0x288   : > { %v2743_v3 = vpack.c.bf16 %v1806_v34, %v1805_v0 }
 0x289   : > { %v2319_v5 = vmul.f32 -1.442695, %v1424_v29  ;;  %v1809_v29 = vld [vmem:[%s3109_s29 + $0x10] sm:$0xff] }
 0x28b   : > { %2882 = vpow2.f32 %v2319_v5 }
 0x28c   : > { %2884 = vrcp.f32 %v1437_v42  ;;  %v1814_v42 = vld [vmem:[%s3109_s29 + $0x38] sm:$0xff] }
 0x28d   : > { %v2879_v45 = vpop.eup %2878 }
 0x28e   : > { %v1438_v4 = vadd.f32 1.0, %v2879_v45 }
 0x290   : > { %2886 = vrcp.f32 %v1438_v4  ;;  %v1815_v4 = vld [vmem:[%s3109_s29 + $0x40] sm:$0xff] }
 0x291   : > { %v2881_v47 = vpop.eup %2880 }
 0x292   : > { %v1439_v48 = vadd.f32 1.0, %v2881_v47  ;;  %v1816_v47 = vld [vmem:[%s3109_s29 + $0x48] sm:$0xff] }
 0x294   : > { %2888 = vrcp.f32 %v1439_v48  ;;  %v2686_v48 = vpack.c.bf16 %v1816_v47, %v1815_v4 }
 0x295   : > { %v2883_v10 = vpop.eup %2882 }
 0x296   : > { %v1440_v52 = vadd.f32 1.0, %v2883_v10  ;;  %v3555_v32 = vpop.eup %2884  ;;  %v1817_v10 = vld [vmem:[%s3109_s29 + $0x50] sm:$0xff] }
 0x297   : > { %v1449_v61 = vmul.f32 %v3555_v32, %v3145_v12 }
 0x298   : > { %2890 = vrcp.f32 %v1440_v52  ;;  %v1818_v52 = vld [vmem:[%s3109_s29 + $0x58] sm:$0xff] }
 0x29a   : > { %v3557_v54 = vpop.eup %2886 }
 0x29b   : > { %v1450_v15 = vmul.f32 %v3557_v54, %v3148_v13 }
 0x29d   : > { %v2665_v36 = vpack.c.bf16 %v1450_v15, %v1449_v61  ;;  %v2689_v61 = vpack.c.bf16 %v1818_v52, %v1817_v10  ;;  %v1819_v15 = vld [vmem:[%s3109_s29 + $0x60] sm:$0xff] }
 0x29e   : > { %v3563_v53 = vpop.eup %2888 }
 0x29f   : > { %2666 = vmatprep.subr.bf16.mxu0 %v2665_v36  ;;  %v1451_v12 = vmul.f32 %v3563_v53, %v3158_v16  ;;  %v2710_v16 = vpack.c.bf16 %v1784_v59, %v1783_v51  ;;  %v1823_v59 = vld [vmem:[%s3109_s29 + $0x80] sm:$0xff] }
 0x2a0   : > { %2668 = vmatpush3.bf16.msra.mxu0 %v2665_v36  ;;  %v1820_v36 = vld [vmem:[%s3109_s29 + $0x68] sm:$0xff] }
 0x2a1   : > { %2673 = vmatprep.subr.bf16.mxu0 %v2968_v31 }
 0x2a2   : > { %v3566_v55 = vpop.eup %2890 }
 0x2a3   : > { %2538 = vmatmul.mubr.msk.f32.vlgmr.msra.gmra.mrb[32].mxu0 %vm472_vm1, %v3142_v11  ;;  %v1452_v13 = vmul.f32 %v3566_v55, %v3161_v17  ;;  %v1785_v17 = vld [vmem:[%s3104_s26 + $0x10] sm:$0xff] }
 0x2a4   : > { %2540 = vmatprep.mubr.msk.f32.mxu0 %vm472_vm1, %v3153_v14  ;;  %v2713_v18 = vpack.c.bf16 %v1786_v58, %v1785_v17  ;;  %v1825_v58 = vld [vmem:[%s3109_s29 + $0x90] sm:$0xff] }
 0x2a5   : > { %v2669_v57 = vpack.c.bf16 %v1452_v13, %v1451_v12  ;;  %v2692_v12 = vpack.c.bf16 %v1820_v36, %v1819_v15  ;;  %v1821_v13 = vld [vmem:[%s3109_s29 + $0x70] sm:$0xff] }
 0x2a7   : > { %2541 = vmatmul.mubr.msk.f32.gmra.mrb[34].mxu0 %vm472_vm1, %v3174_v19  ;;  %2670 = vmatprep.subr.bf16.mxu1 %v2669_v57 }
 0x2a8   : > { %2672 = vmatpush3.bf16.msra.mxu1 %v2669_v57  ;;  %2543 = vmatprep.mubr.msk.f32.mxu0 %vm472_vm1, %v3181_v20  ;;  %v1822_v57 = vld [vmem:[%s3109_s29 + $0x78] sm:$0xff] }
 0x2a9   : > { %2709 = vmatprep.subr.bf16.mxu1 %v2968_v31  ;;  %v2695_v51 = vpack.c.bf16 %v1822_v57, %v1821_v13 }
 0x2ab   : > { %2544 = vmatmul.mubr.msk.f32.gmra.mrb[36].mxu0 %vm472_vm1, %v3192_v21  ;;  %2560 = vmatmul.mubr.msk.f32.vlgmr.msra.gmra.mrb[32].mxu1 %vm472_vm1, %v3142_v11  ;;  %v2716_v11 = vpack.c.bf16 %v1788_v40, %v1787_v28 }
 0x2ac   : > { %2711 = vmatpush1.bf16.msra.mxu1 %v2710_v16  ;;  %2546 = vmatprep.mubr.msk.f32.mxu0 %vm472_vm1, %v3199_v22  ;;  %v1824_v16 = vld [vmem:[%s3109_s29 + $0x88] sm:$0xff] }
 0x2ad   : > { %2562 = vmatprep.mubr.msk.f32.mxu1 %vm472_vm1, %v3153_v14  ;;  %2712 = vmatprep.subr.bf16.mxu1 %v2968_v31  ;;  %v1789_v14 = vld [vmem:[%s3104_s26 + $0x30] sm:$0xff]  ;;  %v2698_v17 = vpack.c.bf16 %v1824_v16, %v1823_v59 }
 0x2af   : > { %2547 = vmatmul.mubr.msk.f32.gmra.mrb[38].mxu0 %vm472_vm1, %v3210_v23  ;;  %2563 = vmatmul.mubr.msk.f32.gmra.mrb[34].mxu1 %vm472_vm1, %v3174_v19  ;;  %v2719_v19 = vpack.c.bf16 %v1790_v63, %v1789_v14  ;;  %v1827_v14 = vld [vmem:[%s3109_s29 + $0xa0] sm:$0xff]  ;;  %v1828_v63 = vld [vmem:[%s3109_s29 + $0xa8] sm:$0xff] }
 0x2b0   : > { %2714 = vmatpush1.bf16.msra.mxu1 %v2713_v18  ;;  %2549 = vmatprep.mubr.msk.f32.mxu0 %vm472_vm1, %v3217_v24  ;;  %v1826_v18 = vld [vmem:[%s3109_s29 + $0x98] sm:$0xff] }
 0x2b1   : > { %2565 = vmatprep.mubr.msk.f32.mxu1 %vm472_vm1, %v3181_v20  ;;  %2715 = vmatprep.subr.bf16.mxu1 %v2968_v31  ;;  %v1791_v20 = vld [vmem:[%s3104_s26 + $0x40] sm:$0xff]  ;;  %v2701_v28 = vpack.c.bf16 %v1826_v18, %v1825_v58 }
 0x2b3   : > { %2550 = vmatmul.mubr.msk.f32.gmra.mrb[40].mxu0 %vm472_vm1, %v3228_v25  ;;  %2566 = vmatmul.mubr.msk.f32.gmra.mrb[36].mxu1 %vm472_vm1, %v3192_v21  ;;  %v2722_v21 = vpack.c.bf16 %v1792_v33, %v1791_v20 }
 0x2b4   : > { %2717 = vmatpush1.bf16.msra.mxu1 %v2716_v11  ;;  %2552 = vmatprep.mubr.msk.f32.mxu0 %vm472_vm1, %v3235_v26 }
 0x2b5   : > { %2568 = vmatprep.mubr.msk.f32.mxu1 %vm472_vm1, %v3199_v22  ;;  %2718 = vmatprep.subr.bf16.mxu1 %v2968_v31  ;;  %v1793_v22 = vld [vmem:[%s3104_s26 + $0x50] sm:$0xff] }
 0x2b7   : > { %2553 = vmatmul.mubr.msk.f32.gmra.mrb[42].mxu0 %vm472_vm1, %v3246_v27  ;;  %2569 = vmatmul.mubr.msk.f32.gmra.mrb[38].mxu1 %vm472_vm1, %v3210_v23  ;;  %v2725_v23 = vpack.c.bf16 %v1794_v6, %v1793_v22  ;;  %v1829_v22 = vld [vmem:[%s3109_s29 + $0xb0] sm:$0xff]  ;;  %v1830_v6 = vld [vmem:[%s3109_s29 + $0xb8] sm:$0xff] }
 0x2b8   : > { %2720 = vmatpush1.bf16.msra.mxu1 %v2719_v19  ;;  %2571 = vmatprep.mubr.msk.f32.mxu1 %vm472_vm1, %v3217_v24  ;;  %v1795_v24 = vld [vmem:[%s3104_s26 + $0x60] sm:$0xff]  ;;  %v2704_v19 = vpack.c.bf16 %v1828_v63, %v1827_v14 }
 0x2b9   : > { %2721 = vmatprep.subr.bf16.mxu1 %v2968_v31 }
 0x2bb   : > { %2572 = vmatmul.mubr.msk.f32.gmra.mrb[40].mxu1 %vm472_vm1, %v3228_v25  ;;  %v2728_v25 = vpack.c.bf16 %v1796_v9, %v1795_v24 }
 0x2bc   : > { %2723 = vmatpush1.bf16.msra.mxu1 %v2722_v21  ;;  %2574 = vmatprep.mubr.msk.f32.mxu1 %vm472_vm1, %v3235_v26  ;;  %v1797_v26 = vld [vmem:[%s3104_s26 + $0x70] sm:$0xff] }
 0x2bd   : > { %2724 = vmatprep.subr.bf16.mxu1 %v2968_v31  ;;  %v2731_v7 = vpack.c.bf16 %v1798_v35, %v1797_v26 }
 0x2bf   : > { %2575 = vmatmul.mubr.msk.f32.gmra.mrb[42].mxu1 %vm472_vm1, %v3246_v27  ;;  %v1800_v27 = vld [vmem:[%s3104_s26 + $0x88] sm:$0xff] }
 0x2c0   : > { %2726 = vmatpush1.bf16.msra.mxu1 %v2725_v23  ;;  %2348 = vmatprep.mubr.msk.f32.mxu1 %vm669_vm2, %v3465_v50  ;;  %v2734_v37 = vpack.c.bf16 %v1800_v27, %v1799_v62  ;;  %v1801_v50 = vld [vmem:[%s3104_s26 + $0x90] sm:$0xff]  ;;  %v2707_v23 = vpack.c.bf16 %v1830_v6, %v1829_v22 }
 0x2c1   : > { %2727 = vmatprep.subr.bf16.mxu1 %v2968_v31  ;;  %v2737_v41 = vpack.c.bf16 %v1802_v38, %v1801_v50 }
 0x2c4   : > { %2729 = vmatpush1.bf16.msra.mxu1 %v2728_v25 }
 0x2c5   : > { %2730 = vmatprep.subr.bf16.mxu1 %v2968_v31 }
 0x2c8   : > { %2732 = vmatpush1.bf16.msra.mxu1 %v2731_v7 }
 0x2c9   : > { %2733 = vmatprep.subr.bf16.mxu1 %v2968_v31 }
 0x2cc   : > { %2735 = vmatpush1.bf16.msra.mxu1 %v2734_v37 }
 0x2cd   : > { %2736 = vmatprep.subr.bf16.mxu1 %v2968_v31 }
 0x2d0   : > { %2738 = vmatpush1.bf16.msra.mxu1 %v2737_v41 }
 0x2d1   : > { %2739 = vmatprep.subr.bf16.mxu1 %v2968_v31 }
 0x2d4   : > { %2741 = vmatpush1.bf16.msra.mxu1 %v2740_v39 }
 0x2d5   : > { %2742 = vmatprep.subr.bf16.mxu1 %v2968_v31 }
 0x2d8   : > { %2744 = vmatpush1.bf16.msra.mxu1 %v2743_v3 }
 0x2db   : > { %1993 = vmatmul.mubr.f32.vlgmr.msra.gmra.mrb[44].mxu1 %v3483_v8  ;;  %v1808_v8 = vld [vmem:[%s3109_s29 + $0x8] sm:$0xff] }
 0x2dc   : > { %2349 = vmatprep.mubr.msk.f32.mxu1 %vm669_vm2, %v3487_v60  ;;  %v2674_v5 = vpack.c.bf16 %v1808_v8, %v1807_v44  ;;  %v1810_v60 = vld [vmem:[%s3109_s29 + $0x18] sm:$0xff] }
 0x2de   : > { %2675 = vmatpush1.bf16.msra.mxu0 %v2674_v5 }
 0x2df   : > { %1998 = vmatmul.mubr.f32.gmra.mrb[46].mxu1 %v3499_v2  ;;  %v2677_v2 = vpack.c.bf16 %v1810_v60, %v1809_v29  ;;  %2676 = vmatprep.subr.bf16.mxu0 %v2968_v31 }
 0x2e0   : > { %2350 = vmatprep.mubr.msk.f32.mxu1 %vm669_vm2, %v3504_v1  ;;  %v1811_v1 = vld [vmem:[%s3109_s29 + $0x20] sm:$0xff] }
 0x2e2   : > { %2678 = vmatpush1.bf16.msra.mxu0 %v2677_v2  ;;  %v2900_v2 = vld [vmem:[%s3085_s28] sm:$0xff] }
 0x2e3   : > { %2003 = vmatmul.mubr.f32.gmra.mrb[48].mxu1 %v3524_v43  ;;  %v1812_v43 = vld [vmem:[%s3109_s29 + $0x28] sm:$0xff]  ;;  %2679 = vmatprep.subr.bf16.mxu0 %v2968_v31 }
 0x2e4   : > { %2351 = vmatprep.mubr.msk.f32.mxu1 %vm669_vm2, %v3521_v49  ;;  %v2680_v49 = vpack.c.bf16 %v1812_v43, %v1811_v1  ;;  %v2901_v1 = vld [vmem:[%s3085_s28 + $0x8] sm:$0xff]  ;;  %v2902_v43 = vld [vmem:[%s3085_s28 + $0x10] sm:$0xff] }
 0x2e6   : > { %2681 = vmatpush1.bf16.msra.mxu0 %v2680_v49  ;;  %v2903_v49 = vld [vmem:[%s3085_s28 + $0x18] sm:$0xff] }
 0x2e7   : > { %2008 = vmatmul.mubr.f32.gmra.mrb[50].mxu1 %v3541_v30  ;;  %v1813_v30 = vld [vmem:[%s3109_s29 + $0x30] sm:$0xff]  ;;  %2682 = vmatprep.subr.bf16.mxu0 %v2968_v31 }
 0x2e8   : > { %v2683_v45 = vpack.c.bf16 %v1814_v42, %v1813_v30 }
 0x2ea   : > { %2684 = vmatpush1.bf16.msra.mxu0 %v2683_v45 }
 0x2eb   : > { %2685 = vmatprep.subr.bf16.mxu0 %v2968_v31 }
 0x2ee   : > { %2687 = vmatpush1.bf16.msra.mxu0 %v2686_v48 }
 0x2ef   : > { %2688 = vmatprep.subr.bf16.mxu0 %v2968_v31 }
 0x2f2   : > { %2690 = vmatpush1.bf16.msra.mxu0 %v2689_v61 }
 0x2f3   : > { %2691 = vmatprep.subr.bf16.mxu0 %v2968_v31 }
 0x2f6   : > { %2693 = vmatpush1.bf16.msra.mxu0 %v2692_v12 }
 0x2f7   : > { %2694 = vmatprep.subr.bf16.mxu0 %v2968_v31 }
 0x2fa   : > { %2696 = vmatpush1.bf16.msra.mxu0 %v2695_v51 }
 0x2fb   : > { %2697 = vmatprep.subr.bf16.mxu0 %v2968_v31 }
 0x2fe   : > { %2699 = vmatpush1.bf16.msra.mxu0 %v2698_v17 }
 0x2ff   : > { %2700 = vmatprep.subr.bf16.mxu0 %v2968_v31 }
 0x302   : > { %2702 = vmatpush1.bf16.msra.mxu0 %v2701_v28 }
 0x303   : > { %2703 = vmatprep.subr.bf16.mxu0 %v2968_v31 }
 0x306   : > { %2705 = vmatpush1.bf16.msra.mxu0 %v2704_v19 }
 0x307   : > { %2706 = vmatprep.subr.bf16.mxu0 %v2968_v31 }
 0x30a   : > { %2708 = vmatpush1.bf16.msra.mxu0 %v2707_v23 }
 0x376   : > { %v3693_v40 = vpop.f32.mrb[32].mxu0 }
 0x377   : > { %v3695_v11 = vpop.f32.mrb[33].mxu0 }
 0x37a   : > { %v2542_v20 = vpop.f32.mrb[34].mxu0 }
 0x37b   : > { %v1529_v33 = vpop.f32.mrb[35].mxu0 }
 0x37c   : > { %v2851_v21 = vpack.i.bf16 %v2542_v20, %v1529_v33 }
 0x37e   : > { %2852 = vrot.lane.b32.xlu0 %v2851_v21, %s2969_s30  ;;  %v2545_v24 = vpop.f32.mrb[36].mxu0  ;;  %v3704_v9 = vpop.f32.mrb[32].mxu1 }
 0x37f   : > { %v1539_v25 = vpop.f32.mrb[37].mxu0  ;;  %v3706_v26 = vpop.f32.mrb[33].mxu1 }
 0x380   : > { %v2856_v35 = vpack.i.bf16 %v2545_v24, %v1539_v25 }
 0x382   : > { %2857 = vrot.lane.b32.xlu1 %v2856_v35, %s2970_s12  ;;  %v2548_v7 = vpop.f32.mrb[38].mxu0  ;;  %v2564_v62 = vpop.f32.mrb[34].mxu1 }
 0x383   : > { %v1549_v27 = vpop.f32.mrb[39].mxu0  ;;  %v1694_v37 = vpop.f32.mrb[35].mxu1 }
 0x384   : > { %v2861_v31 = vpack.i.bf16 %v2548_v7, %v1549_v27  ;;  %v2866_v50 = vpack.i.bf16 %v2564_v62, %v1694_v37 }
 0x386   : > { %2862 = vrot.lane.b32.xlu1 %v2861_v31, %s2971_s20  ;;  %v2551_v38 = vpop.f32.mrb[40].mxu0  ;;  %v2567_v41 = vpop.f32.mrb[36].mxu1 }
 0x387   : > { %v1559_v46 = vpop.f32.mrb[41].mxu0  ;;  %v1704_v56 = vpop.f32.mrb[37].mxu1 }
 0x388   : > { %v2871_v39 = vpack.i.bf16 %v2567_v41, %v1704_v56 }
 0x38a   : > { %v2554_v0 = vpop.f32.mrb[42].mxu0  ;;  %2867 = vrot.lane.b32.xlu1 %v2866_v50, %s2969_s30  ;;  %v2570_v34 = vpop.f32.mrb[38].mxu1 }
 0x38b   : > { %v1569_v3 = vpop.f32.mrb[43].mxu0  ;;  %v1714_v44 = vpop.f32.mrb[39].mxu1 }
 0x38c   : > { %1604 = vrot.lane.b32.xlu0 %v1569_v3, %s2969_s30 }
 0x38e   : > { %v3712_v8 = vpop.f32.mrb[40].mxu1 }
 0x38f   : > { %v1724_v29 = vpop.f32.mrb[41].mxu1 }
 0x390   : > { %1606 = vrot.lane.b32.xlu0 %v2554_v0, %s2969_s30 }
 0x392   : > { %v2576_v5 = vpop.f32.mrb[42].mxu1 }
 0x393   : > { %v1734_v60 = vpop.f32.mrb[43].mxu1 }
 0x394   : > { %2872 = vrot.lane.b32.xlu0 %v2871_v39, %s2970_s12  ;;  %1769 = vrot.lane.b32.xlu1 %v1734_v60, %s2969_s30  ;;  %v2352_v39 = vld [vmem:[%s438_s18] ss:$0 sm:$0xff] }
 0x398   : > { %1761 = vrot.lane.b32.xlu0 %v1714_v44, %s2971_s20  ;;  %1771 = vrot.lane.b32.xlu1 %v2576_v5, %s2969_s30 }
 0x39c   : > { %1763 = vrot.lane.b32.xlu0 %v2570_v34, %s2971_s20  ;;  %2032 = vrot.lane.b32.xlu1 %v2900_v2, %s2969_s30 }
 0x3a0   : > { %2034 = vrot.lane.b32.xlu0 %v2901_v1, %s2969_s30  ;;  %2036 = vrot.lane.b32.xlu1 %v2902_v43, %s2969_s30 }
 0x3a4   : > { %2038 = vrot.lane.b32.xlu0 %v2903_v49, %s2969_s30 }
 0x3ae   : > { %v1994_v30 = vpop.f32.mrb[44].mxu1 }
 0x3af   : > { %v1996_v42 = vpop.f32.mrb[45].mxu1 }
 0x3b2   : > { %v1999_v45 = vpop.f32.mrb[46].mxu1 }
 0x3b3   : > { %v2001_v4 = vpop.f32.mrb[47].mxu1 }
 0x3b6   : > { %v2004_v47 = vpop.f32.mrb[48].mxu1 }
 0x3b7   : > { %v2006_v48 = vpop.f32.mrb[49].mxu1 }
 0x3ba   : > { %v3728_v10 = vpop.f32.mrb[50].mxu1 }
 0x3bb   : > { %v2011_v52 = vpop.f32.mrb[51].mxu1 }
 0x3f0   : > { %v2853_v15 = vpop.permute.xlu0 %2852 }
 0x3f1   : > { %v2854_v12 = vunpack.i.l.bf16 %v2853_v15  ;;  %v2855_v51 = vunpack.i.h.bf16 %v2853_v15 }
 0x3f3   : > { %v1610_v59 = vsel %vm666_vm3, %v3695_v11, %v2854_v12  ;;  %v1611_v20 = vsel %vm666_vm3, %v3693_v40, %v2855_v51 }
 0x3f4   : > { %v2858_v61 = vpop.permute.xlu1 %2857 }
 0x3f5   : > { %v2859_v13 = vunpack.i.l.bf16 %v2858_v61  ;;  %v2860_v17 = vunpack.i.h.bf16 %v2858_v61 }
 0x3f7   : > { %v1612_v58 = vsel %vm669_vm2, %v1610_v59, %v2859_v13  ;;  %v1613_v11 = vsel %vm669_vm2, %v1611_v20, %v2860_v17  ;;  %v2049_v59 = vsub.f32 1.0, %v3557_v54 }
 0x3f8   : > { %v2863_v36 = vpop.permute.xlu1 %2862 }
 0x3f9   : > { %v2864_v57 = vunpack.i.l.bf16 %v2863_v36  ;;  %v2865_v28 = vunpack.i.h.bf16 %v2863_v36 }
 0x3fb   : > { %v1614_v14 = vsel %vm672_vm4, %v1612_v58, %v2864_v57  ;;  %v1615_v22 = vsel %vm672_vm4, %v1613_v11, %v2865_v28  ;;  %v2050_v28 = vsub.f32 1.0, %v3563_v53 }
 0x3fc   : > { %v2868_v63 = vpop.permute.xlu1 %2867 }
 0x3fd   : > { %v2869_v21 = vunpack.i.l.bf16 %v2868_v63  ;;  %v2870_v35 = vunpack.i.h.bf16 %v2868_v63 }
 0x3fe   : > { %v1605_v16 = vpop.permute.xlu0 %1604 }
 0x3ff   : > { %v1616_v18 = vsel %vm666_vm3, %v1559_v46, %v1605_v16  ;;  %v1775_v40 = vsel %vm666_vm3, %v3706_v26, %v2869_v21 }
 0x400   : > { %2344 = vmatprep.mubr.msk.f32.mxu0 %vm669_vm2, %v1616_v18 }
 0x401   : > { %1908 = vmatmul.mubr.f32.vlgmr.msra.gmra.mrb[44].mxu0 %v1614_v14 }
 0x402   : > { %v1607_v19 = vpop.permute.xlu0 %1606 }
 0x403   : > { %v1617_v33 = vsel %vm666_vm3, %v2551_v38, %v1607_v19  ;;  %v1776_v38 = vsel %vm666_vm3, %v3704_v9, %v2870_v35 }
 0x404   : > { %2345 = vmatprep.mubr.msk.f32.mxu0 %vm669_vm2, %v1617_v33 }
 0x405   : > { %1913 = vmatmul.mubr.f32.gmra.mrb[46].mxu0 %v1615_v22 }
 0x406   : > { %v2873_v6 = vpop.permute.xlu0 %2872  ;;  %v1770_v23 = vpop.permute.xlu1 %1769 }
 0x407   : > { %v2874_v24 = vunpack.i.l.bf16 %v2873_v6  ;;  %v1781_v25 = vsel %vm666_vm3, %v1724_v29, %v1770_v23  ;;  %v2875_v62 = vunpack.i.h.bf16 %v2873_v6 }
 0x408   : > { %2346 = vmatprep.mubr.msk.f32.mxu0 %vm669_vm2, %v1781_v25 }
 0x409   : > { %v1777_v7 = vsel %vm669_vm2, %v1775_v40, %v2874_v24  ;;  %v1778_v26 = vsel %vm669_vm2, %v1776_v38, %v2875_v62 }
 0x40a   : > { %v1762_v27 = vpop.permute.xlu0 %1761  ;;  %v1772_v37 = vpop.permute.xlu1 %1771 }
 0x40b   : > { %v1782_v31 = vsel %vm666_vm3, %v3712_v8, %v1772_v37  ;;  %v1779_v50 = vsel %vm672_vm4, %v1777_v7, %v1762_v27 }
 0x40c   : > { %1918 = vmatmul.mubr.f32.gmra.mrb[48].mxu0 %v1779_v50 }
 0x40d   : > { %2347 = vmatprep.mubr.msk.f32.mxu0 %vm669_vm2, %v1782_v31 }
 0x40e   : > { %v1764_v41 = vpop.permute.xlu0 %1763 }
 0x40f   : > { %v1780_v46 = vsel %vm672_vm4, %v1778_v26, %v1764_v41 }
 0x410   : > { %1923 = vmatmul.mubr.f32.gmra.mrb[50].mxu0 %v1780_v46 }
 0x412   : > { %v2035_v61 = vpop.permute.xlu0 %2034 }
 0x413   : > { %v2045_v17 = vmul.f32 %v3557_v54, %v2035_v61  ;;  %v2051_v54 = vsub.f32 1.0, %v3566_v55 }
 0x416   : > { %v2039_v36 = vpop.permute.xlu0 %2038 }
 0x417   : > { %v2047_v33 = vmul.f32 %v3566_v55, %v2039_v36 }
 0x4d4   : > { %v1909_v56 = vpop.f32.mrb[44].mxu0 }
 0x4d5   : > { %v1995_v0 = vadd.f32 %v1994_v30, %v1909_v56  ;;  %v1911_v34 = vpop.f32.mrb[45].mxu0 }
 0x4d7   : > { %v2020_v3 = vadd.f32 %v2352_v39, %v1995_v0 }
 0x4d8   : > { %v1914_v44 = vpop.f32.mrb[46].mxu0 }
 0x4d9   : > { %2892 = vtanh.f32 %v2020_v3  ;;  %v2000_v8 = vadd.f32 %v1999_v45, %v1914_v44  ;;  %v1916_v29 = vpop.f32.mrb[47].mxu0 }
 0x4db   : > { %v2021_v9 = vadd.f32 %v2352_v39, %v2000_v8 }
 0x4dd   : > { %2894 = vtanh.f32 %v2021_v9 }
 0x4df   : > { %v1919_v5 = vpop.f32.mrb[48].mxu0 }
 0x4e0   : > { %v2005_v60 = vadd.f32 %v2004_v47, %v1919_v5  ;;  %v1921_v2 = vpop.f32.mrb[49].mxu0  ;;  %v2033_v47 = vpop.permute.xlu1 %2032 }
 0x4e1   : > { %v2044_v13 = vmul.f32 %v3555_v32, %v2033_v47 }
 0x4e2   : > { %v2022_v1 = vadd.f32 %v2352_v39, %v2005_v60 }
 0x4e3   : > { %v2893_v43 = vpop.eup %2892  ;;  %v1924_v49 = vpop.f32.mrb[50].mxu0 }
 0x4e4   : > { %2896 = vtanh.f32 %v2022_v1  ;;  %v2010_v42 = vadd.f32 %v3728_v10, %v1924_v49  ;;  %v1926_v4 = vpop.f32.mrb[51].mxu0  ;;  %2056 = vrot.lane.b32.xlu1 %v2893_v43, %s2969_s30  ;;  %v2037_v15 = vpop.permute.xlu1 %2036  ;;  %v2048_v10 = vsub.f32 1.0, %v3555_v32 }
 0x4e5   : > { %v2046_v32 = vmul.f32 %v3563_v53, %v2037_v15 }
 0x4e6   : > { %v2023_v30 = vadd.f32 %v2352_v39, %v2010_v42 }
 0x4e7   : > { %v2895_v48 = vpop.eup %2894 }
 0x4e8   : > { %2898 = vtanh.f32 %v2023_v30  ;;  %2058 = vrot.lane.b32.xlu0 %v2895_v48, %s2969_s30 }
 0x4ee   : > { %v2897_v45 = vpop.eup %2896 }
 0x4ef   : > { %2060 = vrot.lane.b32.xlu1 %v2897_v45, %s2969_s30 }
 0x4f2   : > { %v2899_v52 = vpop.eup %2898 }
 0x4f3   : > { %2062 = vrot.lane.b32.xlu0 %v2899_v52, %s2969_s30 }
 0x556   : > { %v2057_v12 = vpop.permute.xlu1 %2056 }
 0x557   : > { %v2068_v57 = vmul.f32 %v2057_v12, %v2048_v10 }
 0x559   : > { %v2072_v51 = vadd.f32 %v2068_v57, %v2044_v13 }
 0x55a   : > { %v2059_v16 = vpop.permute.xlu0 %2058 }
 0x55b   : > { %v2069_v58 = vmul.f32 %v2059_v16, %v2049_v59  ;;  %2080 = vrot.lane.b32.xlu1 %v2072_v51, %s2971_s20 }
 0x55d   : > { %v2073_v18 = vadd.f32 %v2069_v58, %v2045_v17 }
 0x55f   : > { %2082 = vrot.lane.b32.xlu0 %v2073_v18, %s2971_s20 }
 0x561   : > { %v2061_v14 = vpop.permute.xlu1 %2060 }
 0x562   : > { %v2070_v63 = vmul.f32 %v2061_v14, %v2050_v28 }
 0x564   : > { %v2074_v19 = vadd.f32 %v2070_v63, %v2046_v32 }
 0x565   : > { %v2063_v20 = vpop.permute.xlu0 %2062 }
 0x566   : > { %v2071_v11 = vmul.f32 %v2063_v20, %v2051_v54  ;;  %2084 = vrot.lane.b32.xlu1 %v2074_v19, %s2971_s20 }
 0x568   : > { %v2075_v21 = vadd.f32 %v2071_v11, %v2047_v33 }
 0x56a   : > { %2086 = vrot.lane.b32.xlu0 %v2075_v21, %s2971_s20 }
 0x5cd   : > { %v2081_v22 = vpop.permute.xlu1 %2080 }
 0x5ce   : > { %2092 = vst.msk [vmem:[%s3115_s17] sm:$0xff] %vm666_vm3, %v2081_v22  ;;  %2101 = vst.msk [vmem:[#allocation2] sm:$0xff] (!%p2353_p12), %vm666_vm3, %v2081_v22 }
 0x5d1   : > { %v2083_v6 = vpop.permute.xlu0 %2082 }
 0x5d2   : > { %2093 = vst.msk [vmem:[%s3115_s17 + $0x8] sm:$0xff] %vm666_vm3, %v2083_v6  ;;  %2102 = vst.msk [vmem:[#allocation2 + $0x8] sm:$0xff] (!%p2353_p12), %vm666_vm3, %v2083_v6 }
 0x5d7   : > { %2100 = sbr.rel (%p2353_p12) target bundleno = 1502 (0x5de), region = 64 }
 0x5d8   : > { %v2085_v53 = vpop.permute.xlu1 %2084 }
 0x5d9   : > { %2094 = vst.msk [vmem:[%s3115_s17 + $0x10] sm:$0xff] %vm666_vm3, %v2085_v53  ;;  %2103 = vst.msk [vmem:[#allocation2 + $0x10] sm:$0xff] (!%p2353_p12), %vm666_vm3, %v2085_v53 }
 0x5dc   : > { %v2087_v23 = vpop.permute.xlu0 %2086 }
 0x5dd   : > { %2095 = vst.msk [vmem:[%s3115_s17 + $0x18] sm:$0xff] %vm666_vm3, %v2087_v23  ;;  %2104 = vst.msk [vmem:[#allocation2 + $0x18] sm:$0xff] (!%p2353_p12), %vm666_vm3, %v2087_v23 }
 0x5de PF: > { %s2360_s29 = sshll.u32 %s3046_s13, 9  ;;  %s2119_s27 = sshll.u32 %s3115_s17, 4  ;;  %s3797_s27 = int_to_ptr.vmem [resolvable:$true] %s2119_s27 }
 0x5df   : > { %s3794_s16 = scalar_lea.hbm %s3851_s9, %s2360_s29  ;;  %s3868_s14 = sand.u32 1, %s2958_s10  }
 0x5e0   : > { %s3801_s11 = scalar_lea.sflag [#allocation4], %s3868_s14  ;;  %s2904_s15 = scalar_lea.vmem %s3797_s27, 512 }
 0x5e1   : > { %p2905_p13 = scmp.ne.s32.totalorder %s3797_s27, %s2904_s15  ;;  %s2972_s13 = smov [#allocation3]  }
 0x5e2   : > { %s2908_s30 = sshll.u32 %s2972_s13, 4  ;;  %s2909_s30 = int_to_ptr.vmem [resolvable:$false] %s2908_s30 }
 0x5e3   : > { %p2906_p0 = pnand %p2905_p13, %p3063_p5  ;;  %s2910_s12 = scalar_lea.vmem %s2909_s30, 1024 }
 0x5e4   : > { %p2911_p2 = scmp.lt.s32.totalorder %s3797_s27, %s2909_s30  ;;  %p2912_p3 = scmp.lt.s32.totalorder %s2910_s12, %s2904_s15 }
 0x5e5   : > { %p2907_p1 = pneg %p2906_p0 }
 0x5e6   : > { %p2913_p4 = por %p2912_p3, %p2911_p2 }
 0x5e8   : > { %p2914_p7 = pnand %p2913_p4, %p2907_p1 }
 0x5ea   : > { %2917 = shalt.err (!%p2914_p7)
}
 0x5eb   : > { %s2918_s17 = scalar_lea.hbm %s3794_s16, 512  ;;  %s2922_s25 = scalar_lea.hbm %s3851_s9, 1024 }
 0x5ec   : > { %p2919_p8 = scmp.ne.s32.totalorder %s3794_s16, %s2918_s17  ;;  %p2923_p11 = scmp.lt.u32.totalorder %s3794_s16, %s3851_s9 }
 0x5ed   : > { %p2924_p12 = scmp.lt.u32.totalorder %s2922_s25, %s2918_s17  ;;  %p2926_p0 = scmp.lt.u32.totalorder %s2918_s17, %s3794_s16 }
 0x5ee   : > { %p2920_p9 = pnand %p2919_p8, %p3063_p5 }
 0x5ef   : > { %p2925_p13 = por %p2924_p12, %p2923_p11 }
 0x5f0   : > { %p2921_p10 = pneg %p2920_p9 }
 0x5f1   : > { %p2927_p1 = por %p2926_p0, %p2925_p13 }
 0x5f3   : > { %p2928_p2 = pnand %p2927_p1, %p2921_p10 }
 0x5f5   : > { %2931 = shalt.err (!%p2928_p2)
}
 0x5f6   : > { %s2973_s26 = smov 128   ;;  %s2974_s23 = smov 8  }
 0x5f7   : > { %2746 = dma.vmem_to_hbm [thread:$0]  (%p3063_p5), %s3797_s27, 512, %s3794_s16, %s3801_s11, %s2973_s26, %s2973_s26, %s2974_s23  }
 0x5f8 PF: > { %s3869_s29 = sld [smem:[#allocation8_spill]]  ;;  %s3870_s18 = sld [smem:[#allocation6_spill]] }
 0x5fe   : > { %p2752_p3 = scmp.ge.s32.totalorder %s3869_s29, 2  ;;  %s2134_s14 = sand.u32 1, %s3870_s18  }
 0x5ff   : > { %s2135_s15 = scalar_lea.sflag [#allocation4], %s2134_s14 }
 0x600   : > { %p2749_p4 = pnand %p2752_p3, %p3067_p6 }
 0x602   : > { %2949 = dma.done.wait (!%p2749_p4), %s2135_s15, 512  }
 0x603   : > { %2951 = vsyncadd (!%p2749_p4), %s2135_s15, 4294966784  ;;  %s3872_s12 = sld [smem:[#allocation9_spill]]  ;;  %s3873_s13 = sld [smem:[#allocation7_spill]] }
 0x604   : > { %s3874_s11 = sld [smem:[#allocation10_spill]]  ;;  %s3875_s30 = smov %s2958_s10 }
 0x609   : > { %p19_p7 = scmp.ge.s32.totalorder %s3872_s12, 4   ;;  %s3876_s10 = smov %s3873_s13 }
 0x60b   :  { %21 = sbr.rel (!%p19_p7) target bundleno = 3 (0x3), region = 117 }
 0x612   :  { %2140 = vsyncpa [#allocation4], 1 }
 0x613   :  { %2142 = vsyncpa [#allocation4 + $0x1], 1 }

</bundles_post_ra>
